<compile_context>
chip_gen: v7x
topology: tpu7x:2x2x1
jax: 0.10.0
libtpu: 0.0.40
codegen_flags: <defaults>
</compile_context>

<pallas_src>
import jax
import jax.numpy as jnp
import numpy as np
from jax import lax
from jax.experimental import pallas as pl
from jax.experimental.pallas import tpu as pltpu


# ----------------------------------------------------------------------------
# Pallas kernel: whole sequence, both LSTM layers + head, in one invocation.
# ----------------------------------------------------------------------------
def airmodel_kernel(x_ref, wih1_ref, whh1_ref, b1_ref,
                    wih2_ref, whh2_ref, b2_ref,
                    w3_ref, b3_ref,
                    out_ref):
    """x_ref: (T*B, L) time-major rows; out_ref: (B, T)."""
    B, T = out_ref.shape
    H = whh1_ref.shape[0]

    def gate_split(gates):
        # PyTorch gate order [i | f | g | o] along the 4H lane axis.
        # sigmoid / tanh lower to EUP transcendentals (separate VLIW slot ->
        # essentially free next to the MXU / VPU work).
        # NOTE: at H=32 these are sub-vreg lane slices (small XLU relayout);
        # for a scaled model pick H as a multiple of 128 so they become free.
        i = jax.nn.sigmoid(gates[:, 0 * H:1 * H])
        f = jax.nn.sigmoid(gates[:, 1 * H:2 * H])
        g = jnp.tanh(gates[:, 2 * H:3 * H])
        o = jax.nn.sigmoid(gates[:, 3 * H:4 * H])
        return i, f, g, o

    # ---- Layer 1: hoisted, batched input projection (bias folded in). ------
    gx1 = (jnp.dot(x_ref[...], wih1_ref[...],
                   preferred_element_type=jnp.float32)
           + b1_ref[...])                                   # (T*B, 4H)

    # Hoist all weight loads out of the recurrence (loaded into vregs once).
    whh1 = whh1_ref[...]
    wih2 = wih2_ref[...]
    whh2 = whh2_ref[...]
    b2 = b2_ref[...]
    w3 = w3_ref[...]
    b3 = b3_ref[...]

    # ---- Fused layer-1 / layer-2 recurrence + head. -------------------------
    # PyTorch default h0 = c0 = 0 for both layers.
    zeros = jnp.zeros((B, H), jnp.float32)
    h1, c1 = zeros, zeros
    h2, c2 = zeros, zeros

    for t in range(T):                                      # static unroll
        # Layer-1 step t: only h1 @ Whh1 is on layer-1's serial chain.
        g1 = gx1[t * B:(t + 1) * B, :] + jnp.dot(
            h1, whh1, preferred_element_type=jnp.float32)
        i1, f1, gg1, o1 = gate_split(g1)
        c1 = f1 * c1 + i1 * gg1
        h1 = o1 * jnp.tanh(c1)

        # Layer-2 step t: depends only on h1_t and h2_{t-1}, so the scheduler
        # can run it concurrently with layer-1 step t+1 (skewed pipeline).
        g2 = (jnp.dot(h1, wih2, preferred_element_type=jnp.float32) + b2
              + jnp.dot(h2, whh2, preferred_element_type=jnp.float32))
        i2, f2, gg2, o2 = gate_split(g2)
        c2 = f2 * c2 + i2 * gg2
        h2 = o2 * jnp.tanh(c2)

        # Head: (B, H) @ (H, 1) + b3 -- off the recurrent critical path.
        y_t = jnp.dot(h2, w3, preferred_element_type=jnp.float32) + b3  # (B, 1)
        # VMEM store into the output block; the block is written back to HBM
        # exactly once when the (single) grid step finishes.
        out_ref[:, t:t + 1] = y_t.astype(out_ref.dtype)


# ----------------------------------------------------------------------------
# Wrapper
# ----------------------------------------------------------------------------
def airmodel_forward(x, params):
    """x: (B, T, L) float32 (batch_first, like PyTorch) -> (B, T, 1) float32."""
    B, T, L = x.shape
    H = params["whh1"].shape[0]

    # Tiny wrapper-side layout op (256 B at these shapes): present the kernel
    # with time-major rows so per-step gate slices use static row offsets.
    x_tm = jnp.transpose(x, (1, 0, 2)).reshape(T * B, L)

    def full(shape):
        n = len(shape)
        return pl.BlockSpec(shape, lambda i, _n=n: (0,) * _n)

    out_bt = pl.pallas_call(
        airmodel_kernel,
        out_shape=jax.ShapeDtypeStruct((B, T), jnp.float32),
        grid=(1,),
        in_specs=[
            full((T * B, L)),      # x, one DMA of the whole tensor
            full((L, 4 * H)),      # W_ih layer 1 (pre-transposed)
            full((H, 4 * H)),      # W_hh layer 1 (pre-transposed)
            full((1, 4 * H)),      # b_ih + b_hh layer 1
            full((H, 4 * H)),      # W_ih layer 2 (pre-transposed)
            full((H, 4 * H)),      # W_hh layer 2 (pre-transposed)
            full((1, 4 * H)),      # b_ih + b_hh layer 2
            full((H, 1)),          # linear3 weight (pre-transposed)
            full((1, 1)),          # linear3 bias
        ],
        out_specs=full((B, T)),
        compiler_params=pltpu.CompilerParams(
            dimension_semantics=("arbitrary",)),
    )(x_tm,
      params["wih1"], params["whh1"], params["b1"],
      params["wih2"], params["whh2"], params["b2"],
      params["w3"], params["b3"])

    return out_bt[..., None]   # (B, T, 1)


# ----------------------------------------------------------------------------
# Deterministic parameter init (PyTorch shapes; uniform(-1/sqrt(H), 1/sqrt(H)))
# ----------------------------------------------------------------------------
def init_params(key, lookback, hidden):
    k = 1.0 / np.sqrt(hidden)
    ks = jax.random.split(key, 12)
    u = lambda kk, shape: jax.random.uniform(kk, shape, jnp.float32, -k, k)

    # PyTorch stores weight_ih (4H, in), weight_hh (4H, H); we pre-transpose.
    wih1 = u(ks[0], (4 * hidden, lookback)).T            # (L, 4H)
    whh1 = u(ks[1], (4 * hidden, hidden)).T              # (H, 4H)
    b1 = (u(ks[2], (4 * hidden,)) + u(ks[3], (4 * hidden,)))[None, :]   # (1, 4H)
    wih2 = u(ks[4], (4 * hidden, hidden)).T              # (H, 4H)
    whh2 = u(ks[5], (4 * hidden, hidden)).T              # (H, 4H)
    b2 = (u(ks[6], (4 * hidden,)) + u(ks[7], (4 * hidden,)))[None, :]   # (1, 4H)
    w3 = u(ks[8], (1, hidden)).T                         # (H, 1)
    b3 = u(ks[9], (1,))[None, :]                         # (1, 1)
    return dict(wih1=wih1, whh1=whh1, b1=b1,
                wih2=wih2, whh2=whh2, b2=b2,
                w3=w3, b3=b3)


# ----------------------------------------------------------------------------
# Pure-JAX reference (for correctness check)
# ----------------------------------------------------------------------------
def ref_forward(x, params):
    B, T, L = x.shape
    H = params["whh1"].shape[0]

    def cell(carry, x_t, wih, whh, b):
        h, c = carry
        gates = x_t @ wih + h @ whh + b
        i = jax.nn.sigmoid(gates[:, 0 * H:1 * H])
        f = jax.nn.sigmoid(gates[:, 1 * H:2 * H])
        g = jnp.tanh(gates[:, 2 * H:3 * H])
        o = jax.nn.sigmoid(gates[:, 3 * H:4 * H])
        c = f * c + i * g
        h = o * jnp.tanh(c)
        return (h, c), h

    x_tm = jnp.transpose(x, (1, 0, 2))
    init = (jnp.zeros((B, H), jnp.float32), jnp.zeros((B, H), jnp.float32))
    _, h1 = lax.scan(lambda cr, xt: cell(cr, xt, params["wih1"],
                                         params["whh1"], params["b1"]),
                     init, x_tm)
    _, h2 = lax.scan(lambda cr, xt: cell(cr, xt, params["wih2"],
                                         params["whh2"], params["b2"]),
                     init, h1)
    y = h2 @ params["w3"] + params["b3"]
    return jnp.transpose(y, (1, 0, 2))


if __name__ == "__main__":
    B, T, L, H = 2, 8, 4, 32   # batch, seq, lookback (input_size), hidden_size_nodes

    key = jax.random.PRNGKey(0)
    k_x, k_p = jax.random.split(key)
    x = jax.random.normal(k_x, (B, T, L), jnp.float32)
    params = init_params(k_p, L, H)

    out = jax.block_until_ready(airmodel_forward(x, params))
    ref = jax.block_until_ready(ref_forward(x, params))

    assert out.shape == (B, T, 1), out.shape
    np.testing.assert_allclose(np.asarray(out), np.asarray(ref),
                               rtol=1e-5, atol=1e-5)
    print("KERNEL_OK")
</pallas_src>

<mosaic_0001>
module attributes {stable_mosaic.version = 11 : i64} {
  func.func @airmodel_kernel(%arg0: i32, %arg1: memref<16x4xf32, #tpu.memory_space<vmem>>, %arg2: memref<4x128xf32, #tpu.memory_space<vmem>>, %arg3: memref<32x128xf32, #tpu.memory_space<vmem>>, %arg4: memref<1x128xf32, #tpu.memory_space<vmem>>, %arg5: memref<32x128xf32, #tpu.memory_space<vmem>>, %arg6: memref<32x128xf32, #tpu.memory_space<vmem>>, %arg7: memref<1x128xf32, #tpu.memory_space<vmem>>, %arg8: memref<32x1xf32, #tpu.memory_space<vmem>>, %arg9: memref<1x1xf32, #tpu.memory_space<vmem>>, %arg10: memref<2x8xf32, #tpu.memory_space<vmem>>) attributes {dimension_semantics = [#tpu.dimension_semantics<arbitrary>], iteration_bounds = array<i64: 1>, scalar_prefetch = 0 : i64, scratch_operands = 0 : i64, tpu.core_type = #tpu.core_type<tc>, window_params = [{pipeline_mode = #tpu.pipeline_mode<synchronous>, transform_indices = @transform_0, window_bounds = array<i64: 16, 4>}, {pipeline_mode = #tpu.pipeline_mode<synchronous>, transform_indices = @transform_1, window_bounds = array<i64: 4, 128>}, {pipeline_mode = #tpu.pipeline_mode<synchronous>, transform_indices = @transform_2, window_bounds = array<i64: 32, 128>}, {pipeline_mode = #tpu.pipeline_mode<synchronous>, transform_indices = @transform_3, window_bounds = array<i64: 1, 128>}, {pipeline_mode = #tpu.pipeline_mode<synchronous>, transform_indices = @transform_4, window_bounds = array<i64: 32, 128>}, {pipeline_mode = #tpu.pipeline_mode<synchronous>, transform_indices = @transform_5, window_bounds = array<i64: 32, 128>}, {pipeline_mode = #tpu.pipeline_mode<synchronous>, transform_indices = @transform_6, window_bounds = array<i64: 1, 128>}, {pipeline_mode = #tpu.pipeline_mode<synchronous>, transform_indices = @transform_7, window_bounds = array<i64: 32, 1>}, {pipeline_mode = #tpu.pipeline_mode<synchronous>, transform_indices = @transform_8, window_bounds = array<i64: 1, 1>}, {pipeline_mode = #tpu.pipeline_mode<synchronous>, transform_indices = @transform_9, window_bounds = array<i64: 2, 8>}]} {
    %c0 = arith.constant 0 : index
    %c0_0 = arith.constant 0 : index
    %0 = vector.load %arg1[%c0, %c0_0] : memref<16x4xf32, #tpu.memory_space<vmem>>, vector<16x4xf32>
    %c0_1 = arith.constant 0 : index
    %c0_2 = arith.constant 0 : index
    %1 = vector.load %arg2[%c0_1, %c0_2] : memref<4x128xf32, #tpu.memory_space<vmem>>, vector<4x128xf32>
    %cst = arith.constant dense<0.000000e+00> : vector<16x128xf32>
    %2 = tpu.matmul %0, %1, %cst {dimension_numbers = #tpu.dot_dimension_numbers<[1], [0], [0], [1], [0, 0, 1, 1], [], []>} : vector<16x4xf32>, vector<4x128xf32>, vector<16x128xf32> -> vector<16x128xf32>
    %c0_3 = arith.constant 0 : index
    %c0_4 = arith.constant 0 : index
    %3 = vector.load %arg4[%c0_3, %c0_4] : memref<1x128xf32, #tpu.memory_space<vmem>>, vector<1x128xf32>
    %4 = vector.broadcast %3 : vector<1x128xf32> to vector<16x128xf32>
    %5 = arith.addf %2, %4 : vector<16x128xf32>
    %c0_5 = arith.constant 0 : index
    %c0_6 = arith.constant 0 : index
    %6 = vector.load %arg3[%c0_5, %c0_6] : memref<32x128xf32, #tpu.memory_space<vmem>>, vector<32x128xf32>
    %c0_7 = arith.constant 0 : index
    %c0_8 = arith.constant 0 : index
    %7 = vector.load %arg5[%c0_7, %c0_8] : memref<32x128xf32, #tpu.memory_space<vmem>>, vector<32x128xf32>
    %c0_9 = arith.constant 0 : index
    %c0_10 = arith.constant 0 : index
    %8 = vector.load %arg6[%c0_9, %c0_10] : memref<32x128xf32, #tpu.memory_space<vmem>>, vector<32x128xf32>
    %c0_11 = arith.constant 0 : index
    %c0_12 = arith.constant 0 : index
    %9 = vector.load %arg7[%c0_11, %c0_12] : memref<1x128xf32, #tpu.memory_space<vmem>>, vector<1x128xf32>
    %c0_13 = arith.constant 0 : index
    %c0_14 = arith.constant 0 : index
    %10 = vector.load %arg8[%c0_13, %c0_14] : memref<32x1xf32, #tpu.memory_space<vmem>>, vector<32x1xf32>
    %c0_15 = arith.constant 0 : index
    %c0_16 = arith.constant 0 : index
    %11 = vector.load %arg9[%c0_15, %c0_16] : memref<1x1xf32, #tpu.memory_space<vmem>>, vector<1x1xf32>
    %cst_17 = arith.constant 0.000000e+00 : f32
    %12 = vector.broadcast %cst_17 : f32 to vector<2x32xf32>
    %13 = vector.extract_strided_slice %5 {offsets = [0, 0], sizes = [2, 128], strides = [1, 1]} : vector<16x128xf32> to vector<2x128xf32>
    %cst_18 = arith.constant dense<0.000000e+00> : vector<2x128xf32>
    %14 = tpu.matmul %12, %6, %cst_18 {dimension_numbers = #tpu.dot_dimension_numbers<[1], [0], [0], [1], [0, 0, 1, 1], [], []>} : vector<2x32xf32>, vector<32x128xf32>, vector<2x128xf32> -> vector<2x128xf32>
    %15 = arith.addf %13, %14 : vector<2x128xf32>
    %16 = vector.extract_strided_slice %15 {offsets = [0, 0], sizes = [2, 32], strides = [1, 1]} : vector<2x128xf32> to vector<2x32xf32>
    %17 = arith.negf %16 : vector<2x32xf32>
    %18 = math.exp %17 : vector<2x32xf32>
    %cst_19 = arith.constant 1.000000e+00 : f32
    %19 = vector.broadcast %cst_19 : f32 to vector<2x32xf32>
    %20 = arith.addf %19, %18 : vector<2x32xf32>
    %21 = arith.divf %19, %20 : vector<2x32xf32>
    %22 = vector.extract_strided_slice %15 {offsets = [0, 32], sizes = [2, 32], strides = [1, 1]} : vector<2x128xf32> to vector<2x32xf32>
    %23 = arith.negf %22 : vector<2x32xf32>
    %24 = math.exp %23 : vector<2x32xf32>
    %cst_20 = arith.constant 1.000000e+00 : f32
    %25 = vector.broadcast %cst_20 : f32 to vector<2x32xf32>
    %26 = arith.addf %25, %24 : vector<2x32xf32>
    %27 = arith.divf %25, %26 : vector<2x32xf32>
    %28 = vector.extract_strided_slice %15 {offsets = [0, 64], sizes = [2, 32], strides = [1, 1]} : vector<2x128xf32> to vector<2x32xf32>
    %29 = math.tanh %28 : vector<2x32xf32>
    %30 = vector.extract_strided_slice %15 {offsets = [0, 96], sizes = [2, 32], strides = [1, 1]} : vector<2x128xf32> to vector<2x32xf32>
    %31 = arith.negf %30 : vector<2x32xf32>
    %32 = math.exp %31 : vector<2x32xf32>
    %cst_21 = arith.constant 1.000000e+00 : f32
    %33 = vector.broadcast %cst_21 : f32 to vector<2x32xf32>
    %34 = arith.addf %33, %32 : vector<2x32xf32>
    %35 = arith.divf %33, %34 : vector<2x32xf32>
    %36 = arith.mulf %27, %12 : vector<2x32xf32>
    %37 = arith.mulf %21, %29 : vector<2x32xf32>
    %38 = arith.addf %36, %37 : vector<2x32xf32>
    %39 = math.tanh %38 : vector<2x32xf32>
    %40 = arith.mulf %35, %39 : vector<2x32xf32>
    %cst_22 = arith.constant dense<0.000000e+00> : vector<2x128xf32>
    %41 = tpu.matmul %40, %7, %cst_22 {dimension_numbers = #tpu.dot_dimension_numbers<[1], [0], [0], [1], [0, 0, 1, 1], [], []>} : vector<2x32xf32>, vector<32x128xf32>, vector<2x128xf32> -> vector<2x128xf32>
    %42 = vector.broadcast %9 : vector<1x128xf32> to vector<2x128xf32>
    %43 = arith.addf %41, %42 : vector<2x128xf32>
    %cst_23 = arith.constant dense<0.000000e+00> : vector<2x128xf32>
    %44 = tpu.matmul %12, %8, %cst_23 {dimension_numbers = #tpu.dot_dimension_numbers<[1], [0], [0], [1], [0, 0, 1, 1], [], []>} : vector<2x32xf32>, vector<32x128xf32>, vector<2x128xf32> -> vector<2x128xf32>
    %45 = arith.addf %43, %44 : vector<2x128xf32>
    %46 = vector.extract_strided_slice %45 {offsets = [0, 0], sizes = [2, 32], strides = [1, 1]} : vector<2x128xf32> to vector<2x32xf32>
    %47 = arith.negf %46 : vector<2x32xf32>
    %48 = math.exp %47 : vector<2x32xf32>
    %cst_24 = arith.constant 1.000000e+00 : f32
    %49 = vector.broadcast %cst_24 : f32 to vector<2x32xf32>
    %50 = arith.addf %49, %48 : vector<2x32xf32>
    %51 = arith.divf %49, %50 : vector<2x32xf32>
    %52 = vector.extract_strided_slice %45 {offsets = [0, 32], sizes = [2, 32], strides = [1, 1]} : vector<2x128xf32> to vector<2x32xf32>
    %53 = arith.negf %52 : vector<2x32xf32>
    %54 = math.exp %53 : vector<2x32xf32>
    %cst_25 = arith.constant 1.000000e+00 : f32
    %55 = vector.broadcast %cst_25 : f32 to vector<2x32xf32>
    %56 = arith.addf %55, %54 : vector<2x32xf32>
    %57 = arith.divf %55, %56 : vector<2x32xf32>
    %58 = vector.extract_strided_slice %45 {offsets = [0, 64], sizes = [2, 32], strides = [1, 1]} : vector<2x128xf32> to vector<2x32xf32>
    %59 = math.tanh %58 : vector<2x32xf32>
    %60 = vector.extract_strided_slice %45 {offsets = [0, 96], sizes = [2, 32], strides = [1, 1]} : vector<2x128xf32> to vector<2x32xf32>
    %61 = arith.negf %60 : vector<2x32xf32>
    %62 = math.exp %61 : vector<2x32xf32>
    %cst_26 = arith.constant 1.000000e+00 : f32
    %63 = vector.broadcast %cst_26 : f32 to vector<2x32xf32>
    %64 = arith.addf %63, %62 : vector<2x32xf32>
    %65 = arith.divf %63, %64 : vector<2x32xf32>
    %66 = arith.mulf %57, %12 : vector<2x32xf32>
    %67 = arith.mulf %51, %59 : vector<2x32xf32>
    %68 = arith.addf %66, %67 : vector<2x32xf32>
    %69 = math.tanh %68 : vector<2x32xf32>
    %70 = arith.mulf %65, %69 : vector<2x32xf32>
    %cst_27 = arith.constant dense<0.000000e+00> : vector<2x1xf32>
    %71 = tpu.matmul %70, %10, %cst_27 {dimension_numbers = #tpu.dot_dimension_numbers<[1], [0], [0], [1], [0, 0, 1, 1], [], []>} : vector<2x32xf32>, vector<32x1xf32>, vector<2x1xf32> -> vector<2x1xf32>
    %72 = vector.broadcast %11 : vector<1x1xf32> to vector<2x1xf32>
    %73 = arith.addf %71, %72 : vector<2x1xf32>
    %c0_28 = arith.constant 0 : index
    %c0_29 = arith.constant 0 : index
    %74 = vector.load %arg10[%c0_28, %c0_29] : memref<2x8xf32, #tpu.memory_space<vmem>>, vector<2x1xf32>
    tpu.vector_store %arg10[%c0_28, %c0_29], %73 {strides = array<i32>} : memref<2x8xf32, #tpu.memory_space<vmem>>, vector<2x1xf32>,
    %75 = vector.extract_strided_slice %5 {offsets = [2, 0], sizes = [2, 128], strides = [1, 1]} : vector<16x128xf32> to vector<2x128xf32>
    %cst_30 = arith.constant dense<0.000000e+00> : vector<2x128xf32>
    %76 = tpu.matmul %40, %6, %cst_30 {dimension_numbers = #tpu.dot_dimension_numbers<[1], [0], [0], [1], [0, 0, 1, 1], [], []>} : vector<2x32xf32>, vector<32x128xf32>, vector<2x128xf32> -> vector<2x128xf32>
    %77 = arith.addf %75, %76 : vector<2x128xf32>
    %78 = vector.extract_strided_slice %77 {offsets = [0, 0], sizes = [2, 32], strides = [1, 1]} : vector<2x128xf32> to vector<2x32xf32>
    %79 = arith.negf %78 : vector<2x32xf32>
    %80 = math.exp %79 : vector<2x32xf32>
    %cst_31 = arith.constant 1.000000e+00 : f32
    %81 = vector.broadcast %cst_31 : f32 to vector<2x32xf32>
    %82 = arith.addf %81, %80 : vector<2x32xf32>
    %83 = arith.divf %81, %82 : vector<2x32xf32>
    %84 = vector.extract_strided_slice %77 {offsets = [0, 32], sizes = [2, 32], strides = [1, 1]} : vector<2x128xf32> to vector<2x32xf32>
    %85 = arith.negf %84 : vector<2x32xf32>
    %86 = math.exp %85 : vector<2x32xf32>
    %cst_32 = arith.constant 1.000000e+00 : f32
    %87 = vector.broadcast %cst_32 : f32 to vector<2x32xf32>
    %88 = arith.addf %87, %86 : vector<2x32xf32>
    %89 = arith.divf %87, %88 : vector<2x32xf32>
    %90 = vector.extract_strided_slice %77 {offsets = [0, 64], sizes = [2, 32], strides = [1, 1]} : vector<2x128xf32> to vector<2x32xf32>
    %91 = math.tanh %90 : vector<2x32xf32>
    %92 = vector.extract_strided_slice %77 {offsets = [0, 96], sizes = [2, 32], strides = [1, 1]} : vector<2x128xf32> to vector<2x32xf32>
    %93 = arith.negf %92 : vector<2x32xf32>
    %94 = math.exp %93 : vector<2x32xf32>
    %cst_33 = arith.constant 1.000000e+00 : f32
    %95 = vector.broadcast %cst_33 : f32 to vector<2x32xf32>
    %96 = arith.addf %95, %94 : vector<2x32xf32>
    %97 = arith.divf %95, %96 : vector<2x32xf32>
    %98 = arith.mulf %89, %38 : vector<2x32xf32>
    %99 = arith.mulf %83, %91 : vector<2x32xf32>
    %100 = arith.addf %98, %99 : vector<2x32xf32>
    %101 = math.tanh %100 : vector<2x32xf32>
    %102 = arith.mulf %97, %101 : vector<2x32xf32>
    %cst_34 = arith.constant dense<0.000000e+00> : vector<2x128xf32>
    %103 = tpu.matmul %102, %7, %cst_34 {dimension_numbers = #tpu.dot_dimension_numbers<[1], [0], [0], [1], [0, 0, 1, 1], [], []>} : vector<2x32xf32>, vector<32x128xf32>, vector<2x128xf32> -> vector<2x128xf32>
    %104 = vector.broadcast %9 : vector<1x128xf32> to vector<2x128xf32>
    %105 = arith.addf %103, %104 : vector<2x128xf32>
    %cst_35 = arith.constant dense<0.000000e+00> : vector<2x128xf32>
    %106 = tpu.matmul %70, %8, %cst_35 {dimension_numbers = #tpu.dot_dimension_numbers<[1], [0], [0], [1], [0, 0, 1, 1], [], []>} : vector<2x32xf32>, vector<32x128xf32>, vector<2x128xf32> -> vector<2x128xf32>
    %107 = arith.addf %105, %106 : vector<2x128xf32>
    %108 = vector.extract_strided_slice %107 {offsets = [0, 0], sizes = [2, 32], strides = [1, 1]} : vector<2x128xf32> to vector<2x32xf32>
    %109 = arith.negf %108 : vector<2x32xf32>
    %110 = math.exp %109 : vector<2x32xf32>
    %cst_36 = arith.constant 1.000000e+00 : f32
    %111 = vector.broadcast %cst_36 : f32 to vector<2x32xf32>
    %112 = arith.addf %111, %110 : vector<2x32xf32>
    %113 = arith.divf %111, %112 : vector<2x32xf32>
    %114 = vector.extract_strided_slice %107 {offsets = [0, 32], sizes = [2, 32], strides = [1, 1]} : vector<2x128xf32> to vector<2x32xf32>
    %115 = arith.negf %114 : vector<2x32xf32>
    %116 = math.exp %115 : vector<2x32xf32>
    %cst_37 = arith.constant 1.000000e+00 : f32
    %117 = vector.broadcast %cst_37 : f32 to vector<2x32xf32>
    %118 = arith.addf %117, %116 : vector<2x32xf32>
    %119 = arith.divf %117, %118 : vector<2x32xf32>
    %120 = vector.extract_strided_slice %107 {offsets = [0, 64], sizes = [2, 32], strides = [1, 1]} : vector<2x128xf32> to vector<2x32xf32>
    %121 = math.tanh %120 : vector<2x32xf32>
    %122 = vector.extract_strided_slice %107 {offsets = [0, 96], sizes = [2, 32], strides = [1, 1]} : vector<2x128xf32> to vector<2x32xf32>
    %123 = arith.negf %122 : vector<2x32xf32>
    %124 = math.exp %123 : vector<2x32xf32>
    %cst_38 = arith.constant 1.000000e+00 : f32
    %125 = vector.broadcast %cst_38 : f32 to vector<2x32xf32>
    %126 = arith.addf %125, %124 : vector<2x32xf32>
    %127 = arith.divf %125, %126 : vector<2x32xf32>
    %128 = arith.mulf %119, %68 : vector<2x32xf32>
    %129 = arith.mulf %113, %121 : vector<2x32xf32>
    %130 = arith.addf %128, %129 : vector<2x32xf32>
    %131 = math.tanh %130 : vector<2x32xf32>
    %132 = arith.mulf %127, %131 : vector<2x32xf32>
    %cst_39 = arith.constant dense<0.000000e+00> : vector<2x1xf32>
    %133 = tpu.matmul %132, %10, %cst_39 {dimension_numbers = #tpu.dot_dimension_numbers<[1], [0], [0], [1], [0, 0, 1, 1], [], []>} : vector<2x32xf32>, vector<32x1xf32>, vector<2x1xf32> -> vector<2x1xf32>
    %134 = vector.broadcast %11 : vector<1x1xf32> to vector<2x1xf32>
    %135 = arith.addf %133, %134 : vector<2x1xf32>
    %c0_40 = arith.constant 0 : index
    %c1 = arith.constant 1 : index
    %136 = vector.load %arg10[%c0_40, %c1] : memref<2x8xf32, #tpu.memory_space<vmem>>, vector<2x1xf32>
    tpu.vector_store %arg10[%c0_40, %c1], %135 {strides = array<i32>} : memref<2x8xf32, #tpu.memory_space<vmem>>, vector<2x1xf32>,
    %137 = vector.extract_strided_slice %5 {offsets = [4, 0], sizes = [2, 128], strides = [1, 1]} : vector<16x128xf32> to vector<2x128xf32>
    %cst_41 = arith.constant dense<0.000000e+00> : vector<2x128xf32>
    %138 = tpu.matmul %102, %6, %cst_41 {dimension_numbers = #tpu.dot_dimension_numbers<[1], [0], [0], [1], [0, 0, 1, 1], [], []>} : vector<2x32xf32>, vector<32x128xf32>, vector<2x128xf32> -> vector<2x128xf32>
    %139 = arith.addf %137, %138 : vector<2x128xf32>
    %140 = vector.extract_strided_slice %139 {offsets = [0, 0], sizes = [2, 32], strides = [1, 1]} : vector<2x128xf32> to vector<2x32xf32>
    %141 = arith.negf %140 : vector<2x32xf32>
    %142 = math.exp %141 : vector<2x32xf32>
    %cst_42 = arith.constant 1.000000e+00 : f32
    %143 = vector.broadcast %cst_42 : f32 to vector<2x32xf32>
    %144 = arith.addf %143, %142 : vector<2x32xf32>
    %145 = arith.divf %143, %144 : vector<2x32xf32>
    %146 = vector.extract_strided_slice %139 {offsets = [0, 32], sizes = [2, 32], strides = [1, 1]} : vector<2x128xf32> to vector<2x32xf32>
    %147 = arith.negf %146 : vector<2x32xf32>
    %148 = math.exp %147 : vector<2x32xf32>
    %cst_43 = arith.constant 1.000000e+00 : f32
    %149 = vector.broadcast %cst_43 : f32 to vector<2x32xf32>
    %150 = arith.addf %149, %148 : vector<2x32xf32>
    %151 = arith.divf %149, %150 : vector<2x32xf32>
    %152 = vector.extract_strided_slice %139 {offsets = [0, 64], sizes = [2, 32], strides = [1, 1]} : vector<2x128xf32> to vector<2x32xf32>
    %153 = math.tanh %152 : vector<2x32xf32>
    %154 = vector.extract_strided_slice %139 {offsets = [0, 96], sizes = [2, 32], strides = [1, 1]} : vector<2x128xf32> to vector<2x32xf32>
    %155 = arith.negf %154 : vector<2x32xf32>
    %156 = math.exp %155 : vector<2x32xf32>
    %cst_44 = arith.constant 1.000000e+00 : f32
    %157 = vector.broadcast %cst_44 : f32 to vector<2x32xf32>
    %158 = arith.addf %157, %156 : vector<2x32xf32>
    %159 = arith.divf %157, %158 : vector<2x32xf32>
    %160 = arith.mulf %151, %100 : vector<2x32xf32>
    %161 = arith.mulf %145, %153 : vector<2x32xf32>
    %162 = arith.addf %160, %161 : vector<2x32xf32>
    %163 = math.tanh %162 : vector<2x32xf32>
    %164 = arith.mulf %159, %163 : vector<2x32xf32>
    %cst_45 = arith.constant dense<0.000000e+00> : vector<2x128xf32>
    %165 = tpu.matmul %164, %7, %cst_45 {dimension_numbers = #tpu.dot_dimension_numbers<[1], [0], [0], [1], [0, 0, 1, 1], [], []>} : vector<2x32xf32>, vector<32x128xf32>, vector<2x128xf32> -> vector<2x128xf32>
    %166 = vector.broadcast %9 : vector<1x128xf32> to vector<2x128xf32>
    %167 = arith.addf %165, %166 : vector<2x128xf32>
    %cst_46 = arith.constant dense<0.000000e+00> : vector<2x128xf32>
    %168 = tpu.matmul %132, %8, %cst_46 {dimension_numbers = #tpu.dot_dimension_numbers<[1], [0], [0], [1], [0, 0, 1, 1], [], []>} : vector<2x32xf32>, vector<32x128xf32>, vector<2x128xf32> -> vector<2x128xf32>
    %169 = arith.addf %167, %168 : vector<2x128xf32>
    %170 = vector.extract_strided_slice %169 {offsets = [0, 0], sizes = [2, 32], strides = [1, 1]} : vector<2x128xf32> to vector<2x32xf32>
    %171 = arith.negf %170 : vector<2x32xf32>
    %172 = math.exp %171 : vector<2x32xf32>
    %cst_47 = arith.constant 1.000000e+00 : f32
    %173 = vector.broadcast %cst_47 : f32 to vector<2x32xf32>
    %174 = arith.addf %173, %172 : vector<2x32xf32>
    %175 = arith.divf %173, %174 : vector<2x32xf32>
    %176 = vector.extract_strided_slice %169 {offsets = [0, 32], sizes = [2, 32], strides = [1, 1]} : vector<2x128xf32> to vector<2x32xf32>
    %177 = arith.negf %176 : vector<2x32xf32>
    %178 = math.exp %177 : vector<2x32xf32>
    %cst_48 = arith.constant 1.000000e+00 : f32
    %179 = vector.broadcast %cst_48 : f32 to vector<2x32xf32>
    %180 = arith.addf %179, %178 : vector<2x32xf32>
    %181 = arith.divf %179, %180 : vector<2x32xf32>
    %182 = vector.extract_strided_slice %169 {offsets = [0, 64], sizes = [2, 32], strides = [1, 1]} : vector<2x128xf32> to vector<2x32xf32>
    %183 = math.tanh %182 : vector<2x32xf32>
    %184 = vector.extract_strided_slice %169 {offsets = [0, 96], sizes = [2, 32], strides = [1, 1]} : vector<2x128xf32> to vector<2x32xf32>
    %185 = arith.negf %184 : vector<2x32xf32>
    %186 = math.exp %185 : vector<2x32xf32>
    %cst_49 = arith.constant 1.000000e+00 : f32
    %187 = vector.broadcast %cst_49 : f32 to vector<2x32xf32>
    %188 = arith.addf %187, %186 : vector<2x32xf32>
    %189 = arith.divf %187, %188 : vector<2x32xf32>
    %190 = arith.mulf %181, %130 : vector<2x32xf32>
    %191 = arith.mulf %175, %183 : vector<2x32xf32>
    %192 = arith.addf %190, %191 : vector<2x32xf32>
    %193 = math.tanh %192 : vector<2x32xf32>
    %194 = arith.mulf %189, %193 : vector<2x32xf32>
    %cst_50 = arith.constant dense<0.000000e+00> : vector<2x1xf32>
    %195 = tpu.matmul %194, %10, %cst_50 {dimension_numbers = #tpu.dot_dimension_numbers<[1], [0], [0], [1], [0, 0, 1, 1], [], []>} : vector<2x32xf32>, vector<32x1xf32>, vector<2x1xf32> -> vector<2x1xf32>
    %196 = vector.broadcast %11 : vector<1x1xf32> to vector<2x1xf32>
    %197 = arith.addf %195, %196 : vector<2x1xf32>
    %c0_51 = arith.constant 0 : index
    %c2 = arith.constant 2 : index
    %198 = vector.load %arg10[%c0_51, %c2] : memref<2x8xf32, #tpu.memory_space<vmem>>, vector<2x1xf32>
    tpu.vector_store %arg10[%c0_51, %c2], %197 {strides = array<i32>} : memref<2x8xf32, #tpu.memory_space<vmem>>, vector<2x1xf32>,
    %199 = vector.extract_strided_slice %5 {offsets = [6, 0], sizes = [2, 128], strides = [1, 1]} : vector<16x128xf32> to vector<2x128xf32>
    %cst_52 = arith.constant dense<0.000000e+00> : vector<2x128xf32>
    %200 = tpu.matmul %164, %6, %cst_52 {dimension_numbers = #tpu.dot_dimension_numbers<[1], [0], [0], [1], [0, 0, 1, 1], [], []>} : vector<2x32xf32>, vector<32x128xf32>, vector<2x128xf32> -> vector<2x128xf32>
    %201 = arith.addf %199, %200 : vector<2x128xf32>
    %202 = vector.extract_strided_slice %201 {offsets = [0, 0], sizes = [2, 32], strides = [1, 1]} : vector<2x128xf32> to vector<2x32xf32>
    %203 = arith.negf %202 : vector<2x32xf32>
    %204 = math.exp %203 : vector<2x32xf32>
    %cst_53 = arith.constant 1.000000e+00 : f32
    %205 = vector.broadcast %cst_53 : f32 to vector<2x32xf32>
    %206 = arith.addf %205, %204 : vector<2x32xf32>
    %207 = arith.divf %205, %206 : vector<2x32xf32>
    %208 = vector.extract_strided_slice %201 {offsets = [0, 32], sizes = [2, 32], strides = [1, 1]} : vector<2x128xf32> to vector<2x32xf32>
    %209 = arith.negf %208 : vector<2x32xf32>
    %210 = math.exp %209 : vector<2x32xf32>
    %cst_54 = arith.constant 1.000000e+00 : f32
    %211 = vector.broadcast %cst_54 : f32 to vector<2x32xf32>
    %212 = arith.addf %211, %210 : vector<2x32xf32>
    %213 = arith.divf %211, %212 : vector<2x32xf32>
    %214 = vector.extract_strided_slice %201 {offsets = [0, 64], sizes = [2, 32], strides = [1, 1]} : vector<2x128xf32> to vector<2x32xf32>
    %215 = math.tanh %214 : vector<2x32xf32>
    %216 = vector.extract_strided_slice %201 {offsets = [0, 96], sizes = [2, 32], strides = [1, 1]} : vector<2x128xf32> to vector<2x32xf32>
    %217 = arith.negf %216 : vector<2x32xf32>
    %218 = math.exp %217 : vector<2x32xf32>
    %cst_55 = arith.constant 1.000000e+00 : f32
    %219 = vector.broadcast %cst_55 : f32 to vector<2x32xf32>
    %220 = arith.addf %219, %218 : vector<2x32xf32>
    %221 = arith.divf %219, %220 : vector<2x32xf32>
    %222 = arith.mulf %213, %162 : vector<2x32xf32>
    %223 = arith.mulf %207, %215 : vector<2x32xf32>
    %224 = arith.addf %222, %223 : vector<2x32xf32>
    %225 = math.tanh %224 : vector<2x32xf32>
    %226 = arith.mulf %221, %225 : vector<2x32xf32>
    %cst_56 = arith.constant dense<0.000000e+00> : vector<2x128xf32>
    %227 = tpu.matmul %226, %7, %cst_56 {dimension_numbers = #tpu.dot_dimension_numbers<[1], [0], [0], [1], [0, 0, 1, 1], [], []>} : vector<2x32xf32>, vector<32x128xf32>, vector<2x128xf32> -> vector<2x128xf32>
    %228 = vector.broadcast %9 : vector<1x128xf32> to vector<2x128xf32>
    %229 = arith.addf %227, %228 : vector<2x128xf32>
    %cst_57 = arith.constant dense<0.000000e+00> : vector<2x128xf32>
    %230 = tpu.matmul %194, %8, %cst_57 {dimension_numbers = #tpu.dot_dimension_numbers<[1], [0], [0], [1], [0, 0, 1, 1], [], []>} : vector<2x32xf32>, vector<32x128xf32>, vector<2x128xf32> -> vector<2x128xf32>
    %231 = arith.addf %229, %230 : vector<2x128xf32>
    %232 = vector.extract_strided_slice %231 {offsets = [0, 0], sizes = [2, 32], strides = [1, 1]} : vector<2x128xf32> to vector<2x32xf32>
    %233 = arith.negf %232 : vector<2x32xf32>
    %234 = math.exp %233 : vector<2x32xf32>
    %cst_58 = arith.constant 1.000000e+00 : f32
    %235 = vector.broadcast %cst_58 : f32 to vector<2x32xf32>
    %236 = arith.addf %235, %234 : vector<2x32xf32>
    %237 = arith.divf %235, %236 : vector<2x32xf32>
    %238 = vector.extract_strided_slice %231 {offsets = [0, 32], sizes = [2, 32], strides = [1, 1]} : vector<2x128xf32> to vector<2x32xf32>
    %239 = arith.negf %238 : vector<2x32xf32>
    %240 = math.exp %239 : vector<2x32xf32>
    %cst_59 = arith.constant 1.000000e+00 : f32
    %241 = vector.broadcast %cst_59 : f32 to vector<2x32xf32>
    %242 = arith.addf %241, %240 : vector<2x32xf32>
    %243 = arith.divf %241, %242 : vector<2x32xf32>
    %244 = vector.extract_strided_slice %231 {offsets = [0, 64], sizes = [2, 32], strides = [1, 1]} : vector<2x128xf32> to vector<2x32xf32>
    %245 = math.tanh %244 : vector<2x32xf32>
    %246 = vector.extract_strided_slice %231 {offsets = [0, 96], sizes = [2, 32], strides = [1, 1]} : vector<2x128xf32> to vector<2x32xf32>
    %247 = arith.negf %246 : vector<2x32xf32>
    %248 = math.exp %247 : vector<2x32xf32>
    %cst_60 = arith.constant 1.000000e+00 : f32
    %249 = vector.broadcast %cst_60 : f32 to vector<2x32xf32>
    %250 = arith.addf %249, %248 : vector<2x32xf32>
    %251 = arith.divf %249, %250 : vector<2x32xf32>
    %252 = arith.mulf %243, %192 : vector<2x32xf32>
    %253 = arith.mulf %237, %245 : vector<2x32xf32>
    %254 = arith.addf %252, %253 : vector<2x32xf32>
    %255 = math.tanh %254 : vector<2x32xf32>
    %256 = arith.mulf %251, %255 : vector<2x32xf32>
    %cst_61 = arith.constant dense<0.000000e+00> : vector<2x1xf32>
    %257 = tpu.matmul %256, %10, %cst_61 {dimension_numbers = #tpu.dot_dimension_numbers<[1], [0], [0], [1], [0, 0, 1, 1], [], []>} : vector<2x32xf32>, vector<32x1xf32>, vector<2x1xf32> -> vector<2x1xf32>
    %258 = vector.broadcast %11 : vector<1x1xf32> to vector<2x1xf32>
    %259 = arith.addf %257, %258 : vector<2x1xf32>
    %c0_62 = arith.constant 0 : index
    %c3 = arith.constant 3 : index
    %260 = vector.load %arg10[%c0_62, %c3] : memref<2x8xf32, #tpu.memory_space<vmem>>, vector<2x1xf32>
    tpu.vector_store %arg10[%c0_62, %c3], %259 {strides = array<i32>} : memref<2x8xf32, #tpu.memory_space<vmem>>, vector<2x1xf32>,
    %261 = vector.extract_strided_slice %5 {offsets = [8, 0], sizes = [2, 128], strides = [1, 1]} : vector<16x128xf32> to vector<2x128xf32>
    %cst_63 = arith.constant dense<0.000000e+00> : vector<2x128xf32>
    %262 = tpu.matmul %226, %6, %cst_63 {dimension_numbers = #tpu.dot_dimension_numbers<[1], [0], [0], [1], [0, 0, 1, 1], [], []>} : vector<2x32xf32>, vector<32x128xf32>, vector<2x128xf32> -> vector<2x128xf32>
    %263 = arith.addf %261, %262 : vector<2x128xf32>
    %264 = vector.extract_strided_slice %263 {offsets = [0, 0], sizes = [2, 32], strides = [1, 1]} : vector<2x128xf32> to vector<2x32xf32>
    %265 = arith.negf %264 : vector<2x32xf32>
    %266 = math.exp %265 : vector<2x32xf32>
    %cst_64 = arith.constant 1.000000e+00 : f32
    %267 = vector.broadcast %cst_64 : f32 to vector<2x32xf32>
    %268 = arith.addf %267, %266 : vector<2x32xf32>
    %269 = arith.divf %267, %268 : vector<2x32xf32>
    %270 = vector.extract_strided_slice %263 {offsets = [0, 32], sizes = [2, 32], strides = [1, 1]} : vector<2x128xf32> to vector<2x32xf32>
    %271 = arith.negf %270 : vector<2x32xf32>
    %272 = math.exp %271 : vector<2x32xf32>
    %cst_65 = arith.constant 1.000000e+00 : f32
    %273 = vector.broadcast %cst_65 : f32 to vector<2x32xf32>
    %274 = arith.addf %273, %272 : vector<2x32xf32>
    %275 = arith.divf %273, %274 : vector<2x32xf32>
    %276 = vector.extract_strided_slice %263 {offsets = [0, 64], sizes = [2, 32], strides = [1, 1]} : vector<2x128xf32> to vector<2x32xf32>
    %277 = math.tanh %276 : vector<2x32xf32>
    %278 = vector.extract_strided_slice %263 {offsets = [0, 96], sizes = [2, 32], strides = [1, 1]} : vector<2x128xf32> to vector<2x32xf32>
    %279 = arith.negf %278 : vector<2x32xf32>
    %280 = math.exp %279 : vector<2x32xf32>
    %cst_66 = arith.constant 1.000000e+00 : f32
    %281 = vector.broadcast %cst_66 : f32 to vector<2x32xf32>
    %282 = arith.addf %281, %280 : vector<2x32xf32>
    %283 = arith.divf %281, %282 : vector<2x32xf32>
    %284 = arith.mulf %275, %224 : vector<2x32xf32>
    %285 = arith.mulf %269, %277 : vector<2x32xf32>
    %286 = arith.addf %284, %285 : vector<2x32xf32>
    %287 = math.tanh %286 : vector<2x32xf32>
    %288 = arith.mulf %283, %287 : vector<2x32xf32>
    %cst_67 = arith.constant dense<0.000000e+00> : vector<2x128xf32>
    %289 = tpu.matmul %288, %7, %cst_67 {dimension_numbers = #tpu.dot_dimension_numbers<[1], [0], [0], [1], [0, 0, 1, 1], [], []>} : vector<2x32xf32>, vector<32x128xf32>, vector<2x128xf32> -> vector<2x128xf32>
    %290 = vector.broadcast %9 : vector<1x128xf32> to vector<2x128xf32>
    %291 = arith.addf %289, %290 : vector<2x128xf32>
    %cst_68 = arith.constant dense<0.000000e+00> : vector<2x128xf32>
    %292 = tpu.matmul %256, %8, %cst_68 {dimension_numbers = #tpu.dot_dimension_numbers<[1], [0], [0], [1], [0, 0, 1, 1], [], []>} : vector<2x32xf32>, vector<32x128xf32>, vector<2x128xf32> -> vector<2x128xf32>
    %293 = arith.addf %291, %292 : vector<2x128xf32>
    %294 = vector.extract_strided_slice %293 {offsets = [0, 0], sizes = [2, 32], strides = [1, 1]} : vector<2x128xf32> to vector<2x32xf32>
    %295 = arith.negf %294 : vector<2x32xf32>
    %296 = math.exp %295 : vector<2x32xf32>
    %cst_69 = arith.constant 1.000000e+00 : f32
    %297 = vector.broadcast %cst_69 : f32 to vector<2x32xf32>
    %298 = arith.addf %297, %296 : vector<2x32xf32>
    %299 = arith.divf %297, %298 : vector<2x32xf32>
    %300 = vector.extract_strided_slice %293 {offsets = [0, 32], sizes = [2, 32], strides = [1, 1]} : vector<2x128xf32> to vector<2x32xf32>
    %301 = arith.negf %300 : vector<2x32xf32>
    %302 = math.exp %301 : vector<2x32xf32>
    %cst_70 = arith.constant 1.000000e+00 : f32
    %303 = vector.broadcast %cst_70 : f32 to vector<2x32xf32>
    %304 = arith.addf %303, %302 : vector<2x32xf32>
    %305 = arith.divf %303, %304 : vector<2x32xf32>
    %306 = vector.extract_strided_slice %293 {offsets = [0, 64], sizes = [2, 32], strides = [1, 1]} : vector<2x128xf32> to vector<2x32xf32>
    %307 = math.tanh %306 : vector<2x32xf32>
    %308 = vector.extract_strided_slice %293 {offsets = [0, 96], sizes = [2, 32], strides = [1, 1]} : vector<2x128xf32> to vector<2x32xf32>
    %309 = arith.negf %308 : vector<2x32xf32>
    %310 = math.exp %309 : vector<2x32xf32>
    %cst_71 = arith.constant 1.000000e+00 : f32
    %311 = vector.broadcast %cst_71 : f32 to vector<2x32xf32>
    %312 = arith.addf %311, %310 : vector<2x32xf32>
    %313 = arith.divf %311, %312 : vector<2x32xf32>
    %314 = arith.mulf %305, %254 : vector<2x32xf32>
    %315 = arith.mulf %299, %307 : vector<2x32xf32>
    %316 = arith.addf %314, %315 : vector<2x32xf32>
    %317 = math.tanh %316 : vector<2x32xf32>
    %318 = arith.mulf %313, %317 : vector<2x32xf32>
    %cst_72 = arith.constant dense<0.000000e+00> : vector<2x1xf32>
    %319 = tpu.matmul %318, %10, %cst_72 {dimension_numbers = #tpu.dot_dimension_numbers<[1], [0], [0], [1], [0, 0, 1, 1], [], []>} : vector<2x32xf32>, vector<32x1xf32>, vector<2x1xf32> -> vector<2x1xf32>
    %320 = vector.broadcast %11 : vector<1x1xf32> to vector<2x1xf32>
    %321 = arith.addf %319, %320 : vector<2x1xf32>
    %c0_73 = arith.constant 0 : index
    %c4 = arith.constant 4 : index
    %322 = vector.load %arg10[%c0_73, %c4] : memref<2x8xf32, #tpu.memory_space<vmem>>, vector<2x1xf32>
    tpu.vector_store %arg10[%c0_73, %c4], %321 {strides = array<i32>} : memref<2x8xf32, #tpu.memory_space<vmem>>, vector<2x1xf32>,
    %323 = vector.extract_strided_slice %5 {offsets = [10, 0], sizes = [2, 128], strides = [1, 1]} : vector<16x128xf32> to vector<2x128xf32>
    %cst_74 = arith.constant dense<0.000000e+00> : vector<2x128xf32>
    %324 = tpu.matmul %288, %6, %cst_74 {dimension_numbers = #tpu.dot_dimension_numbers<[1], [0], [0], [1], [0, 0, 1, 1], [], []>} : vector<2x32xf32>, vector<32x128xf32>, vector<2x128xf32> -> vector<2x128xf32>
    %325 = arith.addf %323, %324 : vector<2x128xf32>
    %326 = vector.extract_strided_slice %325 {offsets = [0, 0], sizes = [2, 32], strides = [1, 1]} : vector<2x128xf32> to vector<2x32xf32>
    %327 = arith.negf %326 : vector<2x32xf32>
    %328 = math.exp %327 : vector<2x32xf32>
    %cst_75 = arith.constant 1.000000e+00 : f32
    %329 = vector.broadcast %cst_75 : f32 to vector<2x32xf32>
    %330 = arith.addf %329, %328 : vector<2x32xf32>
    %331 = arith.divf %329, %330 : vector<2x32xf32>
    %332 = vector.extract_strided_slice %325 {offsets = [0, 32], sizes = [2, 32], strides = [1, 1]} : vector<2x128xf32> to vector<2x32xf32>
    %333 = arith.negf %332 : vector<2x32xf32>
    %334 = math.exp %333 : vector<2x32xf32>
    %cst_76 = arith.constant 1.000000e+00 : f32
    %335 = vector.broadcast %cst_76 : f32 to vector<2x32xf32>
    %336 = arith.addf %335, %334 : vector<2x32xf32>
    %337 = arith.divf %335, %336 : vector<2x32xf32>
    %338 = vector.extract_strided_slice %325 {offsets = [0, 64], sizes = [2, 32], strides = [1, 1]} : vector<2x128xf32> to vector<2x32xf32>
    %339 = math.tanh %338 : vector<2x32xf32>
    %340 = vector.extract_strided_slice %325 {offsets = [0, 96], sizes = [2, 32], strides = [1, 1]} : vector<2x128xf32> to vector<2x32xf32>
    %341 = arith.negf %340 : vector<2x32xf32>
    %342 = math.exp %341 : vector<2x32xf32>
    %cst_77 = arith.constant 1.000000e+00 : f32
    %343 = vector.broadcast %cst_77 : f32 to vector<2x32xf32>
    %344 = arith.addf %343, %342 : vector<2x32xf32>
    %345 = arith.divf %343, %344 : vector<2x32xf32>
    %346 = arith.mulf %337, %286 : vector<2x32xf32>
    %347 = arith.mulf %331, %339 : vector<2x32xf32>
    %348 = arith.addf %346, %347 : vector<2x32xf32>
    %349 = math.tanh %348 : vector<2x32xf32>
    %350 = arith.mulf %345, %349 : vector<2x32xf32>
    %cst_78 = arith.constant dense<0.000000e+00> : vector<2x128xf32>
    %351 = tpu.matmul %350, %7, %cst_78 {dimension_numbers = #tpu.dot_dimension_numbers<[1], [0], [0], [1], [0, 0, 1, 1], [], []>} : vector<2x32xf32>, vector<32x128xf32>, vector<2x128xf32> -> vector<2x128xf32>
    %352 = vector.broadcast %9 : vector<1x128xf32> to vector<2x128xf32>
    %353 = arith.addf %351, %352 : vector<2x128xf32>
    %cst_79 = arith.constant dense<0.000000e+00> : vector<2x128xf32>
    %354 = tpu.matmul %318, %8, %cst_79 {dimension_numbers = #tpu.dot_dimension_numbers<[1], [0], [0], [1], [0, 0, 1, 1], [], []>} : vector<2x32xf32>, vector<32x128xf32>, vector<2x128xf32> -> vector<2x128xf32>
    %355 = arith.addf %353, %354 : vector<2x128xf32>
    %356 = vector.extract_strided_slice %355 {offsets = [0, 0], sizes = [2, 32], strides = [1, 1]} : vector<2x128xf32> to vector<2x32xf32>
    %357 = arith.negf %356 : vector<2x32xf32>
    %358 = math.exp %357 : vector<2x32xf32>
    %cst_80 = arith.constant 1.000000e+00 : f32
    %359 = vector.broadcast %cst_80 : f32 to vector<2x32xf32>
    %360 = arith.addf %359, %358 : vector<2x32xf32>
    %361 = arith.divf %359, %360 : vector<2x32xf32>
    %362 = vector.extract_strided_slice %355 {offsets = [0, 32], sizes = [2, 32], strides = [1, 1]} : vector<2x128xf32> to vector<2x32xf32>
    %363 = arith.negf %362 : vector<2x32xf32>
    %364 = math.exp %363 : vector<2x32xf32>
    %cst_81 = arith.constant 1.000000e+00 : f32
    %365 = vector.broadcast %cst_81 : f32 to vector<2x32xf32>
    %366 = arith.addf %365, %364 : vector<2x32xf32>
    %367 = arith.divf %365, %366 : vector<2x32xf32>
    %368 = vector.extract_strided_slice %355 {offsets = [0, 64], sizes = [2, 32], strides = [1, 1]} : vector<2x128xf32> to vector<2x32xf32>
    %369 = math.tanh %368 : vector<2x32xf32>
    %370 = vector.extract_strided_slice %355 {offsets = [0, 96], sizes = [2, 32], strides = [1, 1]} : vector<2x128xf32> to vector<2x32xf32>
    %371 = arith.negf %370 : vector<2x32xf32>
    %372 = math.exp %371 : vector<2x32xf32>
    %cst_82 = arith.constant 1.000000e+00 : f32
    %373 = vector.broadcast %cst_82 : f32 to vector<2x32xf32>
    %374 = arith.addf %373, %372 : vector<2x32xf32>
    %375 = arith.divf %373, %374 : vector<2x32xf32>
    %376 = arith.mulf %367, %316 : vector<2x32xf32>
    %377 = arith.mulf %361, %369 : vector<2x32xf32>
    %378 = arith.addf %376, %377 : vector<2x32xf32>
    %379 = math.tanh %378 : vector<2x32xf32>
    %380 = arith.mulf %375, %379 : vector<2x32xf32>
    %cst_83 = arith.constant dense<0.000000e+00> : vector<2x1xf32>
    %381 = tpu.matmul %380, %10, %cst_83 {dimension_numbers = #tpu.dot_dimension_numbers<[1], [0], [0], [1], [0, 0, 1, 1], [], []>} : vector<2x32xf32>, vector<32x1xf32>, vector<2x1xf32> -> vector<2x1xf32>
    %382 = vector.broadcast %11 : vector<1x1xf32> to vector<2x1xf32>
    %383 = arith.addf %381, %382 : vector<2x1xf32>
    %c0_84 = arith.constant 0 : index
    %c5 = arith.constant 5 : index
    %384 = vector.load %arg10[%c0_84, %c5] : memref<2x8xf32, #tpu.memory_space<vmem>>, vector<2x1xf32>
    tpu.vector_store %arg10[%c0_84, %c5], %383 {strides = array<i32>} : memref<2x8xf32, #tpu.memory_space<vmem>>, vector<2x1xf32>,
    %385 = vector.extract_strided_slice %5 {offsets = [12, 0], sizes = [2, 128], strides = [1, 1]} : vector<16x128xf32> to vector<2x128xf32>
    %cst_85 = arith.constant dense<0.000000e+00> : vector<2x128xf32>
    %386 = tpu.matmul %350, %6, %cst_85 {dimension_numbers = #tpu.dot_dimension_numbers<[1], [0], [0], [1], [0, 0, 1, 1], [], []>} : vector<2x32xf32>, vector<32x128xf32>, vector<2x128xf32> -> vector<2x128xf32>
    %387 = arith.addf %385, %386 : vector<2x128xf32>
    %388 = vector.extract_strided_slice %387 {offsets = [0, 0], sizes = [2, 32], strides = [1, 1]} : vector<2x128xf32> to vector<2x32xf32>
    %389 = arith.negf %388 : vector<2x32xf32>
    %390 = math.exp %389 : vector<2x32xf32>
    %cst_86 = arith.constant 1.000000e+00 : f32
    %391 = vector.broadcast %cst_86 : f32 to vector<2x32xf32>
    %392 = arith.addf %391, %390 : vector<2x32xf32>
    %393 = arith.divf %391, %392 : vector<2x32xf32>
    %394 = vector.extract_strided_slice %387 {offsets = [0, 32], sizes = [2, 32], strides = [1, 1]} : vector<2x128xf32> to vector<2x32xf32>
    %395 = arith.negf %394 : vector<2x32xf32>
    %396 = math.exp %395 : vector<2x32xf32>
    %cst_87 = arith.constant 1.000000e+00 : f32
    %397 = vector.broadcast %cst_87 : f32 to vector<2x32xf32>
    %398 = arith.addf %397, %396 : vector<2x32xf32>
    %399 = arith.divf %397, %398 : vector<2x32xf32>
    %400 = vector.extract_strided_slice %387 {offsets = [0, 64], sizes = [2, 32], strides = [1, 1]} : vector<2x128xf32> to vector<2x32xf32>
    %401 = math.tanh %400 : vector<2x32xf32>
    %402 = vector.extract_strided_slice %387 {offsets = [0, 96], sizes = [2, 32], strides = [1, 1]} : vector<2x128xf32> to vector<2x32xf32>
    %403 = arith.negf %402 : vector<2x32xf32>
    %404 = math.exp %403 : vector<2x32xf32>
    %cst_88 = arith.constant 1.000000e+00 : f32
    %405 = vector.broadcast %cst_88 : f32 to vector<2x32xf32>
    %406 = arith.addf %405, %404 : vector<2x32xf32>
    %407 = arith.divf %405, %406 : vector<2x32xf32>
    %408 = arith.mulf %399, %348 : vector<2x32xf32>
    %409 = arith.mulf %393, %401 : vector<2x32xf32>
    %410 = arith.addf %408, %409 : vector<2x32xf32>
    %411 = math.tanh %410 : vector<2x32xf32>
    %412 = arith.mulf %407, %411 : vector<2x32xf32>
    %cst_89 = arith.constant dense<0.000000e+00> : vector<2x128xf32>
    %413 = tpu.matmul %412, %7, %cst_89 {dimension_numbers = #tpu.dot_dimension_numbers<[1], [0], [0], [1], [0, 0, 1, 1], [], []>} : vector<2x32xf32>, vector<32x128xf32>, vector<2x128xf32> -> vector<2x128xf32>
    %414 = vector.broadcast %9 : vector<1x128xf32> to vector<2x128xf32>
    %415 = arith.addf %413, %414 : vector<2x128xf32>
    %cst_90 = arith.constant dense<0.000000e+00> : vector<2x128xf32>
    %416 = tpu.matmul %380, %8, %cst_90 {dimension_numbers = #tpu.dot_dimension_numbers<[1], [0], [0], [1], [0, 0, 1, 1], [], []>} : vector<2x32xf32>, vector<32x128xf32>, vector<2x128xf32> -> vector<2x128xf32>
    %417 = arith.addf %415, %416 : vector<2x128xf32>
    %418 = vector.extract_strided_slice %417 {offsets = [0, 0], sizes = [2, 32], strides = [1, 1]} : vector<2x128xf32> to vector<2x32xf32>
    %419 = arith.negf %418 : vector<2x32xf32>
    %420 = math.exp %419 : vector<2x32xf32>
    %cst_91 = arith.constant 1.000000e+00 : f32
    %421 = vector.broadcast %cst_91 : f32 to vector<2x32xf32>
    %422 = arith.addf %421, %420 : vector<2x32xf32>
    %423 = arith.divf %421, %422 : vector<2x32xf32>
    %424 = vector.extract_strided_slice %417 {offsets = [0, 32], sizes = [2, 32], strides = [1, 1]} : vector<2x128xf32> to vector<2x32xf32>
    %425 = arith.negf %424 : vector<2x32xf32>
    %426 = math.exp %425 : vector<2x32xf32>
    %cst_92 = arith.constant 1.000000e+00 : f32
    %427 = vector.broadcast %cst_92 : f32 to vector<2x32xf32>
    %428 = arith.addf %427, %426 : vector<2x32xf32>
    %429 = arith.divf %427, %428 : vector<2x32xf32>
    %430 = vector.extract_strided_slice %417 {offsets = [0, 64], sizes = [2, 32], strides = [1, 1]} : vector<2x128xf32> to vector<2x32xf32>
    %431 = math.tanh %430 : vector<2x32xf32>
    %432 = vector.extract_strided_slice %417 {offsets = [0, 96], sizes = [2, 32], strides = [1, 1]} : vector<2x128xf32> to vector<2x32xf32>
    %433 = arith.negf %432 : vector<2x32xf32>
    %434 = math.exp %433 : vector<2x32xf32>
    %cst_93 = arith.constant 1.000000e+00 : f32
    %435 = vector.broadcast %cst_93 : f32 to vector<2x32xf32>
    %436 = arith.addf %435, %434 : vector<2x32xf32>
    %437 = arith.divf %435, %436 : vector<2x32xf32>
    %438 = arith.mulf %429, %378 : vector<2x32xf32>
    %439 = arith.mulf %423, %431 : vector<2x32xf32>
    %440 = arith.addf %438, %439 : vector<2x32xf32>
    %441 = math.tanh %440 : vector<2x32xf32>
    %442 = arith.mulf %437, %441 : vector<2x32xf32>
    %cst_94 = arith.constant dense<0.000000e+00> : vector<2x1xf32>
    %443 = tpu.matmul %442, %10, %cst_94 {dimension_numbers = #tpu.dot_dimension_numbers<[1], [0], [0], [1], [0, 0, 1, 1], [], []>} : vector<2x32xf32>, vector<32x1xf32>, vector<2x1xf32> -> vector<2x1xf32>
    %444 = vector.broadcast %11 : vector<1x1xf32> to vector<2x1xf32>
    %445 = arith.addf %443, %444 : vector<2x1xf32>
    %c0_95 = arith.constant 0 : index
    %c6 = arith.constant 6 : index
    %446 = vector.load %arg10[%c0_95, %c6] : memref<2x8xf32, #tpu.memory_space<vmem>>, vector<2x1xf32>
    tpu.vector_store %arg10[%c0_95, %c6], %445 {strides = array<i32>} : memref<2x8xf32, #tpu.memory_space<vmem>>, vector<2x1xf32>,
    %447 = vector.extract_strided_slice %5 {offsets = [14, 0], sizes = [2, 128], strides = [1, 1]} : vector<16x128xf32> to vector<2x128xf32>
    %cst_96 = arith.constant dense<0.000000e+00> : vector<2x128xf32>
    %448 = tpu.matmul %412, %6, %cst_96 {dimension_numbers = #tpu.dot_dimension_numbers<[1], [0], [0], [1], [0, 0, 1, 1], [], []>} : vector<2x32xf32>, vector<32x128xf32>, vector<2x128xf32> -> vector<2x128xf32>
    %449 = arith.addf %447, %448 : vector<2x128xf32>
    %450 = vector.extract_strided_slice %449 {offsets = [0, 0], sizes = [2, 32], strides = [1, 1]} : vector<2x128xf32> to vector<2x32xf32>
    %451 = arith.negf %450 : vector<2x32xf32>
    %452 = math.exp %451 : vector<2x32xf32>
    %cst_97 = arith.constant 1.000000e+00 : f32
    %453 = vector.broadcast %cst_97 : f32 to vector<2x32xf32>
    %454 = arith.addf %453, %452 : vector<2x32xf32>
    %455 = arith.divf %453, %454 : vector<2x32xf32>
    %456 = vector.extract_strided_slice %449 {offsets = [0, 32], sizes = [2, 32], strides = [1, 1]} : vector<2x128xf32> to vector<2x32xf32>
    %457 = arith.negf %456 : vector<2x32xf32>
    %458 = math.exp %457 : vector<2x32xf32>
    %cst_98 = arith.constant 1.000000e+00 : f32
    %459 = vector.broadcast %cst_98 : f32 to vector<2x32xf32>
    %460 = arith.addf %459, %458 : vector<2x32xf32>
    %461 = arith.divf %459, %460 : vector<2x32xf32>
    %462 = vector.extract_strided_slice %449 {offsets = [0, 64], sizes = [2, 32], strides = [1, 1]} : vector<2x128xf32> to vector<2x32xf32>
    %463 = math.tanh %462 : vector<2x32xf32>
    %464 = vector.extract_strided_slice %449 {offsets = [0, 96], sizes = [2, 32], strides = [1, 1]} : vector<2x128xf32> to vector<2x32xf32>
    %465 = arith.negf %464 : vector<2x32xf32>
    %466 = math.exp %465 : vector<2x32xf32>
    %cst_99 = arith.constant 1.000000e+00 : f32
    %467 = vector.broadcast %cst_99 : f32 to vector<2x32xf32>
    %468 = arith.addf %467, %466 : vector<2x32xf32>
    %469 = arith.divf %467, %468 : vector<2x32xf32>
    %470 = arith.mulf %461, %410 : vector<2x32xf32>
    %471 = arith.mulf %455, %463 : vector<2x32xf32>
    %472 = arith.addf %470, %471 : vector<2x32xf32>
    %473 = math.tanh %472 : vector<2x32xf32>
    %474 = arith.mulf %469, %473 : vector<2x32xf32>
    %cst_100 = arith.constant dense<0.000000e+00> : vector<2x128xf32>
    %475 = tpu.matmul %474, %7, %cst_100 {dimension_numbers = #tpu.dot_dimension_numbers<[1], [0], [0], [1], [0, 0, 1, 1], [], []>} : vector<2x32xf32>, vector<32x128xf32>, vector<2x128xf32> -> vector<2x128xf32>
    %476 = vector.broadcast %9 : vector<1x128xf32> to vector<2x128xf32>
    %477 = arith.addf %475, %476 : vector<2x128xf32>
    %cst_101 = arith.constant dense<0.000000e+00> : vector<2x128xf32>
    %478 = tpu.matmul %442, %8, %cst_101 {dimension_numbers = #tpu.dot_dimension_numbers<[1], [0], [0], [1], [0, 0, 1, 1], [], []>} : vector<2x32xf32>, vector<32x128xf32>, vector<2x128xf32> -> vector<2x128xf32>
    %479 = arith.addf %477, %478 : vector<2x128xf32>
    %480 = vector.extract_strided_slice %479 {offsets = [0, 0], sizes = [2, 32], strides = [1, 1]} : vector<2x128xf32> to vector<2x32xf32>
    %481 = arith.negf %480 : vector<2x32xf32>
    %482 = math.exp %481 : vector<2x32xf32>
    %cst_102 = arith.constant 1.000000e+00 : f32
    %483 = vector.broadcast %cst_102 : f32 to vector<2x32xf32>
    %484 = arith.addf %483, %482 : vector<2x32xf32>
    %485 = arith.divf %483, %484 : vector<2x32xf32>
    %486 = vector.extract_strided_slice %479 {offsets = [0, 32], sizes = [2, 32], strides = [1, 1]} : vector<2x128xf32> to vector<2x32xf32>
    %487 = arith.negf %486 : vector<2x32xf32>
    %488 = math.exp %487 : vector<2x32xf32>
    %cst_103 = arith.constant 1.000000e+00 : f32
    %489 = vector.broadcast %cst_103 : f32 to vector<2x32xf32>
    %490 = arith.addf %489, %488 : vector<2x32xf32>
    %491 = arith.divf %489, %490 : vector<2x32xf32>
    %492 = vector.extract_strided_slice %479 {offsets = [0, 64], sizes = [2, 32], strides = [1, 1]} : vector<2x128xf32> to vector<2x32xf32>
    %493 = math.tanh %492 : vector<2x32xf32>
    %494 = vector.extract_strided_slice %479 {offsets = [0, 96], sizes = [2, 32], strides = [1, 1]} : vector<2x128xf32> to vector<2x32xf32>
    %495 = arith.negf %494 : vector<2x32xf32>
    %496 = math.exp %495 : vector<2x32xf32>
    %cst_104 = arith.constant 1.000000e+00 : f32
    %497 = vector.broadcast %cst_104 : f32 to vector<2x32xf32>
    %498 = arith.addf %497, %496 : vector<2x32xf32>
    %499 = arith.divf %497, %498 : vector<2x32xf32>
    %500 = arith.mulf %491, %440 : vector<2x32xf32>
    %501 = arith.mulf %485, %493 : vector<2x32xf32>
    %502 = arith.addf %500, %501 : vector<2x32xf32>
    %503 = math.tanh %502 : vector<2x32xf32>
    %504 = arith.mulf %499, %503 : vector<2x32xf32>
    %cst_105 = arith.constant dense<0.000000e+00> : vector<2x1xf32>
    %505 = tpu.matmul %504, %10, %cst_105 {dimension_numbers = #tpu.dot_dimension_numbers<[1], [0], [0], [1], [0, 0, 1, 1], [], []>} : vector<2x32xf32>, vector<32x1xf32>, vector<2x1xf32> -> vector<2x1xf32>
    %506 = vector.broadcast %11 : vector<1x1xf32> to vector<2x1xf32>
    %507 = arith.addf %505, %506 : vector<2x1xf32>
    %c0_106 = arith.constant 0 : index
    %c7 = arith.constant 7 : index
    %508 = vector.load %arg10[%c0_106, %c7] : memref<2x8xf32, #tpu.memory_space<vmem>>, vector<2x1xf32>
    tpu.vector_store %arg10[%c0_106, %c7], %507 {strides = array<i32>} : memref<2x8xf32, #tpu.memory_space<vmem>>, vector<2x1xf32>,
    return
  }
  func.func @transform_0(%arg0: i32) -> (i32, i32) {
    %c0_i32 = arith.constant 0 : i32
    %c0_i32_0 = arith.constant 0 : i32
    %c0_i32_1 = arith.constant 0 : i32
    return %c0_i32, %c0_i32_0 : i32, i32
  }
  func.func @transform_1(%arg0: i32) -> (i32, i32) {
    %c0_i32 = arith.constant 0 : i32
    %c0_i32_0 = arith.constant 0 : i32
    %c0_i32_1 = arith.constant 0 : i32
    return %c0_i32, %c0_i32_0 : i32, i32
  }
  func.func @transform_2(%arg0: i32) -> (i32, i32) {
    %c0_i32 = arith.constant 0 : i32
    %c0_i32_0 = arith.constant 0 : i32
    %c0_i32_1 = arith.constant 0 : i32
    return %c0_i32, %c0_i32_0 : i32, i32
  }
  func.func @transform_3(%arg0: i32) -> (i32, i32) {
    %c0_i32 = arith.constant 0 : i32
    %c0_i32_0 = arith.constant 0 : i32
    %c0_i32_1 = arith.constant 0 : i32
    return %c0_i32, %c0_i32_0 : i32, i32
  }
  func.func @transform_4(%arg0: i32) -> (i32, i32) {
    %c0_i32 = arith.constant 0 : i32
    %c0_i32_0 = arith.constant 0 : i32
    %c0_i32_1 = arith.constant 0 : i32
    return %c0_i32, %c0_i32_0 : i32, i32
  }
  func.func @transform_5(%arg0: i32) -> (i32, i32) {
    %c0_i32 = arith.constant 0 : i32
    %c0_i32_0 = arith.constant 0 : i32
    %c0_i32_1 = arith.constant 0 : i32
    return %c0_i32, %c0_i32_0 : i32, i32
  }
  func.func @transform_6(%arg0: i32) -> (i32, i32) {
    %c0_i32 = arith.constant 0 : i32
    %c0_i32_0 = arith.constant 0 : i32
    %c0_i32_1 = arith.constant 0 : i32
    return %c0_i32, %c0_i32_0 : i32, i32
  }
  func.func @transform_7(%arg0: i32) -> (i32, i32) {
    %c0_i32 = arith.constant 0 : i32
    %c0_i32_0 = arith.constant 0 : i32
    %c0_i32_1 = arith.constant 0 : i32
    return %c0_i32, %c0_i32_0 : i32, i32
  }
  func.func @transform_8(%arg0: i32) -> (i32, i32) {
    %c0_i32 = arith.constant 0 : i32
    %c0_i32_0 = arith.constant 0 : i32
    %c0_i32_1 = arith.constant 0 : i32
    return %c0_i32, %c0_i32_0 : i32, i32
  }
  func.func @transform_9(%arg0: i32) -> (i32, i32) {
    %c0_i32 = arith.constant 0 : i32
    %c0_i32_0 = arith.constant 0 : i32
    %c0_i32_1 = arith.constant 0 : i32
    return %c0_i32, %c0_i32_0 : i32, i32
  }
}

</mosaic_0001>

<bundles_post_ra>
// kernel: tpu_custom_call.1
= control target key start
LH: loop header
LB: loop body
LE: loop exit
PB: predicated region body
PF: predicated region fallthrough
CT: control target
= control target key end

     0   :  { %s4586_s0 = inlined_call_operand.vmem [shape: f32[16,4], index: 0, kind: input, shape index: {}]   ;;  %s4587_s1 = inlined_call_operand.hbm [shape: f32[4,128], index: 1, kind: input, shape index: {}]   ;;  %s4588_s2 = inlined_call_operand.vmem [shape: f32[32,128], index: 2, kind: input, shape index: {}]   ;;  %s4589_s3 = inlined_call_operand.vmem [shape: f32[1,128], index: 3, kind: input, shape index: {}]   ;;  %s4590_s4 = inlined_call_operand.vmem [shape: f32[32,128], index: 4, kind: input, shape index: {}]   ;;  %s4591_s5 = inlined_call_operand.hbm [shape: f32[32,128], index: 5, kind: input, shape index: {}]   ;;  %s4592_s6 = inlined_call_operand.vmem [shape: f32[1,128], index: 6, kind: input, shape index: {}]   ;;  %s4593_s7 = inlined_call_operand.vmem [shape: f32[32,1], index: 7, kind: input, shape index: {}]   ;;  %s4594_s8 = inlined_call_operand.<no memory space> [shape: f32[1,1], index: 8, kind: input, shape index: {}]   ;;  %s4595_s9 = inlined_call_operand.hbm [shape: f32[2,8], index: 9, kind: output, shape index: {}]  }
   0x1   :  { %v14_v0 = vstv %s4594_s8 }
   0x2   :  { %15 = vst [vmem:[#allocation2] sm:$0x1] %v14_v0 }
   0x3   :  { %16 = vsyncpa [#allocation4], 0 }
   0x4   :  { %17 = vsyncpa [#allocation7], 0 }
   0x5   :  { %18 = vsyncpa [#allocation5], 0  ;;  %s4023_s11 = smov [#allocation3]   ;;  %s4024_s13 = smov [#allocation6]  }
   0x6   :  { %s27_s12 = sshll.u32 %s4023_s11, 4  ;;  %s42_s14 = sshll.u32 %s4024_s13, 4  ;;  %s28_s12 = int_to_ptr.vmem [resolvable:$true] %s27_s12  ;;  %s4093_s14 = int_to_ptr.vmem [resolvable:$true] %s42_s14 }
   0x7   :  { %s3951_s17 = scalar_lea.hbm %s4587_s1, 64 }
   0x8   :  { %p3952_p0 = scmp.ne.s32.totalorder %s4587_s1, %s3951_s17  ;;  %p3955_p1 = scmp.lt.u32.totalorder %s3951_s17, %s4587_s1 }
   0xa   :  { %p3957_p2 = pnand %p3955_p1, %p3952_p0 }
   0xc   :  { %3960 = shalt.err (!%p3957_p2)
}
   0xd   :  { %s3961_s21 = scalar_lea.vmem %s28_s12, 64  ;;  %p3966_p4 = scmp.lt.s32.totalorder %s28_s12, %s28_s12 }
   0xe   :  { %p3962_p3 = scmp.ne.s32.totalorder %s28_s12, %s3961_s21  ;;  %p3967_p5 = scmp.lt.s32.totalorder %s3961_s21, %s3961_s21 }
  0x10   :  { %p3968_p6 = por %p3967_p5, %p3966_p4 }
  0x12   :  { %p3969_p7 = pnand %p3968_p6, %p3962_p3 }
  0x14   :  { %3972 = shalt.err (!%p3969_p7)
}
  0x15   :  { %30 = dma.hbm_to_vmem [thread:$0]  %s4587_s1, 64, %s28_s12, [#allocation4]  }
  0x16   :  { %s3973_s26 = scalar_lea.hbm %s4591_s5, 512 }
  0x17   :  { %p3974_p8 = scmp.ne.s32.totalorder %s4591_s5, %s3973_s26  ;;  %p3977_p9 = scmp.lt.u32.totalorder %s3973_s26, %s4591_s5 }
  0x19   :  { %p3979_p10 = pnand %p3977_p9, %p3974_p8 }
  0x1b   :  { %3982 = shalt.err (!%p3979_p10)
}
  0x1c   :  { %s3983_s10 = scalar_lea.vmem %s4093_s14, 512  ;;  %p3988_p12 = scmp.lt.s32.totalorder %s4093_s14, %s4093_s14 }
  0x1d   :  { %p3984_p11 = scmp.ne.s32.totalorder %s4093_s14, %s3983_s10  ;;  %p3989_p13 = scmp.lt.s32.totalorder %s3983_s10, %s3983_s10 }
  0x1f   :  { %p3990_p0 = por %p3989_p13, %p3988_p12 }
  0x21   :  { %p3991_p1 = pnand %p3990_p0, %p3984_p11 }
  0x23   :  { %3994 = shalt.err (!%p3991_p1)
}
  0x24   :  { %s4025_s1 = smov 128   ;;  %s4026_s11 = smov 8  }
  0x25   :  { %48 = dma.hbm_to_vmem [thread:$0]  %s4591_s5, 512, %s4093_s14, [#allocation7], %s4025_s1, %s4025_s1, %s4026_s11  }
  0x26   :  { %4017 = dma.done.wait [#allocation4], 64  }
  0x27   :  { %4018 = vsyncadd [#allocation4], 4294967232 }
  0x28   :  { %4019 = dma.done.wait [#allocation7], 512  }
  0x29   :  { %4020 = vsyncadd [#allocation7], 4294966784  ;;  %v4027_v1 = vmov 0.0|0.0   ;;  %vm4028_vm0 = vmmov 0   ;;  %v4029_v2 = vmov 0.0   ;;  %vm78_vm1 = vcmask 1043456  }
  0x2a   :  { %3588 = vmatprep.subr.bf16.mxu1 %v4027_v1  ;;  %3244 = vmatprep.mubr.msk.f32.mxu1 %vm4028_vm0, %v4029_v2  ;;  %vm71_vm2 = vcmask 31744   ;;  %v157_v3 = vld [vmem:[%s4588_s2] sm:$0xff]  ;;  %v158_v4 = vld [vmem:[%s4588_s2 + $0x8] sm:$0xff]  ;;  %v159_v9 = vld [vmem:[%s4588_s2 + $0x10] sm:$0xff]  ;;  %s4030_s24 = smov 64   ;;  %vm175_vm3 = vcmask 261120  }
  0x2b   :  { %v63_v5 = vld [vmem:[#allocation3] sm:$0xf]  ;;  %v4133_v6 = vpack.c.bf16 %v158_v4, %v157_v3  ;;  %v62_v8 = vld [vmem:[%s4586_s0 + $0x8] sm:$0xff]  ;;  %v160_v10 = vld [vmem:[%s4588_s2 + $0x18] sm:$0xff]  ;;  %vm531_vm4 = vcmask 1024   ;;  %s4033_s8 = smov 3  }
  0x2c   :  { %3231 = vmatprep.subr.msk.mxu0 %vm78_vm1, %v63_v5  ;;  %v61_v7 = vld [vmem:[%s4586_s0] sm:$0xff]  ;;  %v4148_v11 = vpack.c.bf16 %v160_v10, %v159_v9  ;;  %v162_v31 = vld [vmem:[%s4590_s4 + $0x8] sm:$0xff]  ;;  %v163_v32 = vld [vmem:[%s4590_s4 + $0x10] sm:$0xff]  ;;  %s4034_s20 = smov 5   ;;  %vm884_vm5 = vcmask 9224   ;;  %s4035_s21 = smov 2  }
  0x2d   :  { %3232 = vmatpush3.msk.msra.mxu0 %vm78_vm1, %v63_v5  ;;  %3233 = vmatprep.mubr.msk.f32.mxu0 %vm71_vm2, %v61_v7  ;;  %v3016_v12 = vld [vmem:[%s4589_s3] ss:$0 sm:$0xff]  ;;  %s4031_s3 = smov 32   ;;  %v164_v34 = vld [vmem:[%s4590_s4 + $0x18] sm:$0xff]  ;;  %v165_v39 = vld [vmem:[#allocation6] sm:$0xff]  ;;  %s4036_s22 = smov 4  }
  0x2e   :  { %3590 = vmatpush3.bf16.msra.mxu1 %v4133_v6  ;;  %3234 = vmatmul.mubr.msk.f32.vlgmr.msra.gmra.mrb[0].mxu0 %vm71_vm2, %v62_v8  ;;  %v161_v30 = vld [vmem:[%s4590_s4] sm:$0xff]  ;;  %v4187_v35 = vpack.c.bf16 %v164_v34, %v163_v32  ;;  %v166_v40 = vld [vmem:[#allocation6 + $0x8] sm:$0xff]  ;;  %v167_v42 = vld [vmem:[#allocation6 + $0x10] sm:$0xff]  ;;  %s4037_s23 = smov 6   ;;  %vm1237_vm6 = vcmask 17424   ;;  %vm1590_vm7 = vcmask 25624  }
  0x2f   :  { %3591 = vmatprep.subr.bf16.mxu1 %v4027_v1  ;;  %3594 = vmatprep.subr.bf16.mxu0 %v4027_v1  ;;  %v4181_v33 = vpack.c.bf16 %v162_v31, %v161_v30  ;;  %v4194_v41 = vpack.c.bf16 %v166_v40, %v165_v39  ;;  %v168_v43 = vld [vmem:[#allocation6 + $0x18] sm:$0xff]  ;;  %v171_v61 = vld [vmem:[%s4593_s7 + $0x8] sm:$0xff]  ;;  %v172_v62 = vld [vmem:[%s4593_s7 + $0x10] sm:$0xff]  ;;  %vm1939_vm8 = vcmask 33824   ;;  %vm2292_vm9 = vcmask 42024   ;;  %s4038_s0 = smov 7  }
  0x30   :  { %3255 = vmatprep.mubr.msk.f32.mxu0 %vm4028_vm0, %v4029_v2  ;;  %v4198_v45 = vpack.c.bf16 %v168_v43, %v167_v42  ;;  %v4215_v46 = vld [vmem:[%s4592_s6] ss:$0 sm:$0xff]  ;;  %v173_v0 = vld [vmem:[%s4593_s7 + $0x18] sm:$0xff]  ;;  %vm2645_vm10 = vcmask 50224   ;;  %s4039_s2 = smov [#allocation8]   ;;  %vm2998_vm11 = vcmask 58424  }
  0x31   :  { %3596 = vmatpush3.bf16.msra.mxu0 %v4181_v33  ;;  %v170_v60 = vld [vmem:[%s4593_s7] sm:$0xff]  ;;  %v4238_v3 = vpack.c.bf16 %v173_v0, %v172_v62 }
  0x32   :  { %3593 = vmatpush3.bf16.msra.mxu1 %v4148_v11  ;;  %3597 = vmatprep.subr.bf16.mxu0 %v4027_v1  ;;  %v4232_v63 = vpack.c.bf16 %v171_v61, %v170_v60  ;;  %v3024_v9 = vld [vmem:[#allocation2] ss:$0 sm:$0xff] }
  0x33   :  { %3606 = vmatprep.subr.bf16.mxu1 %v4027_v1 }
  0x35   :  { %3245 = vmatmul.mubr.f32.vlgmr.msra.gmra.mrb[0].mxu1 %v4029_v2  ;;  %3599 = vmatpush3.bf16.msra.mxu0 %v4187_v35 }
  0x36   :  { %3277 = vmatprep.mubr.msk.f32.mxu1 %vm4028_vm0, %v4029_v2  ;;  %3600 = vmatprep.subr.bf16.mxu0 %v4027_v1 }
  0x37   :  { %3608 = vmatpush3.bf16.msra.mxu1 %v4232_v63 }
  0x38   :  { %3609 = vmatprep.subr.bf16.mxu1 %v4027_v1 }
  0x3b   :  { %3611 = vmatpush3.bf16.msra.mxu1 %v4238_v3 }
  0x3c   :  { %3612 = vmatprep.subr.bf16.mxu1 %v4027_v1 }
 0x101   :  { %v3235_v13 = vpop.f32.mrb[0].mxu0 }
 0x102   :  { %v4162_v14 = vadd.f32 %v3235_v13, %v3016_v12  ;;  %v148_v15 = vpop.f32.mrb[1].mxu0 }
 0x103   :  { %v4164_v16 = vadd.f32 %v3016_v12, %v148_v15 }
 0x108   :  { %v245_v17 = vpop.f32.mrb[0].mxu1 }
 0x109   :  { %v249_v18 = vadd.f32 %v245_v17, %v4164_v16  ;;  %v3246_v19 = vpop.f32.mrb[1].mxu1 }
 0x10b   :  { %3821 = vtanh.f32 %v249_v18  ;;  %v3020_v21 = vmul.f32 -1.442695, %v249_v18 }
 0x10d   :  { %3823 = vpow2.f32 %v3020_v21 }
 0x115   :  { %v3822_v20 = vpop.eup %3821 }
 0x116   :  { %259 = vrot.lane.b32.xlu0 %v3822_v20, %s4030_s24 }
 0x117   :  { %v3824_v22 = vpop.eup %3823 }
 0x118   :  { %v253_v23 = vadd.f32 1.0, %v3824_v22 }
 0x11a   :  { %3825 = vrcp.f32 %v253_v23 }
 0x124   :  { %v3826_v24 = vpop.eup %3825 }
 0x125   :  { %v257_v27 = vmul.f32 0.0, %v3826_v24 }
 0x188   :  { %v260_v25 = vpop.permute.xlu0 %259 }
 0x189   :  { %v262_v26 = vmul.f32 %v3826_v24, %v260_v25 }
 0x18b   :  { %264 = vrot.lane.b32.xlu0 %v262_v26, %s4031_s3 }
 0x1fd   :  { %v265_v28 = vpop.permute.xlu0 %264 }
 0x1fe   :  { %v4169_v29 = vadd.f32 %v265_v28, %v257_v27 }
 0x200   :  { %3827 = vtanh.f32 %v4169_v29  ;;  %v615_v27 = vrot.slane %v4169_v29, 6 }
 0x20a   :  { %v3828_v36 = vpop.eup %3827 }
 0x20b   :  { %270 = vrot.lane.b32.xlu1 %v3828_v36, %s4030_s24 }
 0x27d   :  { %v271_v37 = vpop.permute.xlu1 %270 }
 0x27e   :  { %v273_v38 = vmul.f32 %v3826_v24, %v271_v37 }
 0x280   :  { %281 = vrot.lane.b32.xlu1 %v273_v38, %s4031_s3 }
 0x2f2   :  { %v282_v44 = vpop.permute.xlu1 %281 }
 0x2f3   :  { %3256 = vmatmul.mubr.msk.f32.vlgmr.msra.gmra.mrb[2].mxu0 %vm175_vm3, %v282_v44 }
 0x2f4   :  { %3602 = vmatpush3.bf16.msra.mxu0 %v4194_v41  ;;  %3266 = vmatprep.mubr.msk.f32.mxu0 %vm4028_vm0, %v4029_v2 }
 0x2f5   :  { %3603 = vmatprep.subr.bf16.mxu0 %v4027_v1 }
 0x2f8   :  { %3605 = vmatpush3.bf16.msra.mxu0 %v4198_v45 }
 0x2f9   :  { %3618 = vmatprep.subr.bf16.mxu0 %v4027_v1 }
 0x2fb   :  { %3267 = vmatmul.mubr.f32.vlgmr.msra.gmra.mrb[2].mxu0 %v4029_v2 }
 0x2fc   :  { %3620 = vmatpush3.bf16.msra.mxu0 %v4181_v33  ;;  %3299 = vmatprep.mubr.msk.f32.mxu0 %vm4028_vm0, %v4029_v2 }
 0x2fd   :  { %3621 = vmatprep.subr.bf16.mxu0 %v4027_v1 }
 0x300   :  { %3623 = vmatpush3.bf16.msra.mxu0 %v4187_v35 }
 0x301   :  { %3624 = vmatprep.subr.bf16.mxu0 %v4027_v1 }
 0x3ce   :  { %v421_v47 = vpop.f32.mrb[2].mxu0 }
 0x3cf   :  { %v3780_v48 = vadd.f32 %v4215_v46, %v421_v47  ;;  %v3268_v49 = vpop.f32.mrb[3].mxu0 }
 0x3d1   :  { %3829 = vtanh.f32 %v3780_v48  ;;  %v3023_v51 = vmul.f32 -1.442695, %v3780_v48 }
 0x3d3   :  { %3831 = vpow2.f32 %v3023_v51 }
 0x3db   :  { %v3830_v50 = vpop.eup %3829 }
 0x3dc   :  { %435 = vrot.lane.b32.xlu0 %v3830_v50, %s4030_s24 }
 0x3dd   :  { %v3832_v52 = vpop.eup %3831 }
 0x3de   :  { %v429_v53 = vadd.f32 1.0, %v3832_v52 }
 0x3e0   :  { %3833 = vrcp.f32 %v429_v53 }
 0x3ea   :  { %v3834_v54 = vpop.eup %3833 }
 0x3eb   :  { %v433_v57 = vmul.f32 0.0, %v3834_v54 }
 0x44e   :  { %v436_v55 = vpop.permute.xlu0 %435 }
 0x44f   :  { %v438_v56 = vmul.f32 %v3834_v54, %v436_v55 }
 0x451   :  { %440 = vrot.lane.b32.xlu1 %v438_v56, %s4031_s3 }
 0x4c3   :  { %v441_v58 = vpop.permute.xlu1 %440 }
 0x4c4   :  { %v4220_v59 = vadd.f32 %v441_v58, %v433_v57 }
 0x4c6   :  { %3835 = vtanh.f32 %v4220_v59 }
 0x4d0   :  { %v3836_v4 = vpop.eup %3835 }
 0x4d1   :  { %446 = vrot.lane.b32.xlu0 %v3836_v4, %s4030_s24 }
 0x543   :  { %v447_v5 = vpop.permute.xlu0 %446 }
 0x544   :  { %v449_v7 = vmul.f32 %v3834_v54, %v447_v5 }
 0x546   :  { %457 = vrot.lane.b32.xlu1 %v449_v7, %s4031_s3 }
 0x5b8   :  { %v458_v8 = vpop.permute.xlu1 %457 }
 0x5b9   :  { %3278 = vmatmul.mubr.msk.f32.vlgmr.msra.gmra.mrb[2].mxu1 %vm175_vm3, %v458_v8 }
 0x5ba   :  { %3614 = vmatpush3.bf16.msra.mxu1 %v4133_v6  ;;  %3288 = vmatprep.mubr.msk.f32.mxu1 %vm4028_vm0, %v4029_v2 }
 0x5bb   :  { %3615 = vmatprep.subr.bf16.mxu1 %v4027_v1 }
 0x5be   :  { %3617 = vmatpush3.bf16.msra.mxu1 %v4148_v11 }
 0x5bf   :  { %3630 = vmatprep.subr.bf16.mxu1 %v4027_v1 }
 0x5c1   :  { %3289 = vmatmul.mubr.msk.f32.vlgmr.msra.gmra.mrb[4].mxu1 %vm175_vm3, %v282_v44 }
 0x5c2   :  { %3632 = vmatpush3.bf16.msra.mxu1 %v4232_v63  ;;  %3321 = vmatprep.mubr.msk.f32.mxu1 %vm4028_vm0, %v4029_v2 }
 0x5c3   :  { %3633 = vmatprep.subr.bf16.mxu1 %v4027_v1 }
 0x5c6   :  { %3635 = vmatpush3.bf16.msra.mxu1 %v4238_v3 }
 0x5c7   :  { %3636 = vmatprep.subr.bf16.mxu1 %v4027_v1 }
 0x68c   :  { %v527_v10 = vpop.f32.mrb[2].mxu1 }
 0x68d   :  { %v528_v12 = vadd.f32 %v3024_v9, %v527_v10  ;;  %v3279_v13 = vpop.f32.mrb[3].mxu1 }
 0x68f   :  { %532 = vst.msk [vmem:[#allocation8] sm:$0x3] %vm531_vm4, %v528_v12 }
 0x694   :  { %v599_v15 = vpop.f32.mrb[4].mxu1 }
 0x695   :  { %v604_v17 = vrot.slane %v599_v15, 6  ;;  %v3290_v18 = vpop.f32.mrb[5].mxu1 }
 0x697   :  { %v606_v19 = vadd.f32 %v604_v17, %v4164_v16 }
 0x699   :  { %3837 = vtanh.f32 %v606_v19  ;;  %v3027_v21 = vmul.f32 -1.442695, %v606_v19 }
 0x69b   :  { %3839 = vpow2.f32 %v3027_v21 }
 0x6a3   :  { %v3838_v20 = vpop.eup %3837 }
 0x6a4   :  { %619 = vrot.lane.b32.xlu0 %v3838_v20, %s4030_s24 }
 0x6a5   :  { %v3840_v22 = vpop.eup %3839 }
 0x6a6   :  { %v610_v23 = vadd.f32 1.0, %v3840_v22 }
 0x6a8   :  { %3841 = vrcp.f32 %v610_v23 }
 0x6b2   :  { %v3842_v24 = vpop.eup %3841 }
 0x6b3   :  { %v617_v28 = vmul.f32 %v3842_v24, %v615_v27 }
 0x716   :  { %v620_v25 = vpop.permute.xlu0 %619 }
 0x717   :  { %v622_v26 = vmul.f32 %v3842_v24, %v620_v25 }
 0x719   :  { %624 = vrot.lane.b32.xlu1 %v622_v26, %s4031_s3 }
 0x78b   :  { %v625_v30 = vpop.permute.xlu1 %624 }
 0x78c   :  { %v4263_v31 = vadd.f32 %v625_v30, %v617_v28 }
 0x78e   :  { %3843 = vtanh.f32 %v4263_v31  ;;  %v968_v13 = vrot.slane %v4263_v31, 6 }
 0x798   :  { %v3844_v32 = vpop.eup %3843 }
 0x799   :  { %630 = vrot.lane.b32.xlu0 %v3844_v32, %s4030_s24 }
 0x80b   :  { %v631_v34 = vpop.permute.xlu0 %630 }
 0x80c   :  { %v633_v36 = vmul.f32 %v3842_v24, %v631_v34 }
 0x80e   :  { %v635_v37 = vrot.slane %v633_v36, 2 }
 0x810   :  { %636 = vrot.lane.b32.xlu1 %v635_v37, %s4031_s3 }
 0x882   :  { %v637_v38 = vpop.permute.xlu1 %636 }
 0x883   :  { %3300 = vmatmul.mubr.msk.f32.vlgmr.msra.gmra.mrb[4].mxu0 %vm175_vm3, %v637_v38 }
 0x884   :  { %3626 = vmatpush3.bf16.msra.mxu0 %v4194_v41  ;;  %3310 = vmatprep.mubr.msk.f32.mxu0 %vm4028_vm0, %v4029_v2 }
 0x885   :  { %3627 = vmatprep.subr.bf16.mxu0 %v4027_v1 }
 0x888   :  { %3629 = vmatpush3.bf16.msra.mxu0 %v4198_v45 }
 0x889   :  { %3642 = vmatprep.subr.bf16.mxu0 %v4027_v1 }
 0x88b   :  { %3311 = vmatmul.mubr.msk.f32.vlgmr.msra.gmra.mrb[4].mxu0 %vm175_vm3, %v458_v8 }
 0x88c   :  { %3644 = vmatpush3.bf16.msra.mxu0 %v4181_v33  ;;  %3343 = vmatprep.mubr.msk.f32.mxu0 %vm4028_vm0, %v4029_v2 }
 0x88d   :  { %3645 = vmatprep.subr.bf16.mxu0 %v4027_v1 }
 0x890   :  { %3647 = vmatpush3.bf16.msra.mxu0 %v4187_v35 }
 0x891   :  { %3648 = vmatprep.subr.bf16.mxu0 %v4027_v1 }
 0x95e   :  { %v776_v29 = vpop.f32.mrb[4].mxu0 }
 0x95f   :  { %v3781_v39 = vadd.f32 %v4215_v46, %v776_v29  ;;  %v3312_v40 = vpop.f32.mrb[5].mxu0 }
 0x961   :  { %3845 = vtanh.f32 %v3781_v39  ;;  %v3030_v43 = vmul.f32 -1.442695, %v3781_v39 }
 0x963   :  { %3847 = vpow2.f32 %v3030_v43 }
 0x96b   :  { %v3846_v42 = vpop.eup %3845 }
 0x96c   :  { %790 = vrot.lane.b32.xlu0 %v3846_v42, %s4030_s24 }
 0x96d   :  { %v3848_v44 = vpop.eup %3847 }
 0x96e   :  { %v784_v47 = vadd.f32 1.0, %v3848_v44 }
 0x970   :  { %3849 = vrcp.f32 %v784_v47 }
 0x97a   :  { %v3850_v48 = vpop.eup %3849 }
 0x97b   :  { %v788_v51 = vmul.f32 %v3850_v48, %v4220_v59 }
 0x9de   :  { %v791_v49 = vpop.permute.xlu0 %790 }
 0x9df   :  { %v793_v50 = vmul.f32 %v3850_v48, %v791_v49 }
 0x9e1   :  { %795 = vrot.lane.b32.xlu1 %v793_v50, %s4031_s3 }
 0xa53   :  { %v796_v52 = vpop.permute.xlu1 %795 }
 0xa54   :  { %v4286_v53 = vadd.f32 %v796_v52, %v788_v51 }
 0xa56   :  { %3851 = vtanh.f32 %v4286_v53 }
 0xa60   :  { %v3852_v54 = vpop.eup %3851 }
 0xa61   :  { %801 = vrot.lane.b32.xlu0 %v3852_v54, %s4030_s24 }
 0xad3   :  { %v802_v55 = vpop.permute.xlu0 %801 }
 0xad4   :  { %v804_v56 = vmul.f32 %v3850_v48, %v802_v55 }
 0xad6   :  { %806 = vrot.lane.b32.xlu1 %v804_v56, %s4031_s3 }
 0xb48   :  { %v807_v57 = vpop.permute.xlu1 %806 }
 0xb49   :  { %3322 = vmatmul.mubr.msk.f32.vlgmr.msra.gmra.mrb[6].mxu1 %vm175_vm3, %v807_v57 }
 0xb4a   :  { %3638 = vmatpush3.bf16.msra.mxu1 %v4133_v6  ;;  %3332 = vmatprep.mubr.msk.f32.mxu1 %vm4028_vm0, %v4029_v2 }
 0xb4b   :  { %3639 = vmatprep.subr.bf16.mxu1 %v4027_v1 }
 0xb4e   :  { %3641 = vmatpush3.bf16.msra.mxu1 %v4148_v11 }
 0xb4f   :  { %3654 = vmatprep.subr.bf16.mxu1 %v4027_v1 }
 0xb51   :  { %3333 = vmatmul.mubr.msk.f32.vlgmr.msra.gmra.mrb[8].mxu1 %vm175_vm3, %v637_v38 }
 0xb52   :  { %3656 = vmatpush3.bf16.msra.mxu1 %v4232_v63  ;;  %3365 = vmatprep.mubr.msk.f32.mxu1 %vm4028_vm0, %v4029_v2 }
 0xb53   :  { %3657 = vmatprep.subr.bf16.mxu1 %v4027_v1 }
 0xb56   :  { %3659 = vmatpush3.bf16.msra.mxu1 %v4238_v3 }
 0xb57   :  { %3660 = vmatprep.subr.bf16.mxu1 %v4027_v1 }
 0xc1c   :  { %v4305_v58 = vpop.f32.mrb[6].mxu1 }
 0xc1d   :  { %v3323_v59 = vpop.f32.mrb[7].mxu1 }
 0xc24   :  { %v952_v60 = vpop.f32.mrb[8].mxu1 }
 0xc25   :  { %v957_v61 = vrot.slane %v952_v60, 4  ;;  %v3334_v62 = vpop.f32.mrb[9].mxu1 }
 0xc27   :  { %v959_v0 = vadd.f32 %v957_v61, %v4164_v16 }
 0xc29   :  { %3853 = vtanh.f32 %v959_v0  ;;  %v3033_v5 = vmul.f32 -1.442695, %v959_v0 }
 0xc2b   :  { %3855 = vpow2.f32 %v3033_v5 }
 0xc33   :  { %v3854_v4 = vpop.eup %3853 }
 0xc34   :  { %972 = vrot.lane.b32.xlu0 %v3854_v4, %s4030_s24 }
 0xc35   :  { %v3856_v7 = vpop.eup %3855 }
 0xc36   :  { %v963_v8 = vadd.f32 1.0, %v3856_v7 }
 0xc38   :  { %3857 = vrcp.f32 %v963_v8 }
 0xc42   :  { %v3858_v9 = vpop.eup %3857 }
 0xc43   :  { %v970_v15 = vmul.f32 %v3858_v9, %v968_v13 }
 0xca6   :  { %v973_v10 = vpop.permute.xlu0 %972 }
 0xca7   :  { %v975_v12 = vmul.f32 %v3858_v9, %v973_v10 }
 0xca9   :  { %977 = vrot.lane.b32.xlu1 %v975_v12, %s4031_s3 }
 0xd1b   :  { %v978_v17 = vpop.permute.xlu1 %977 }
 0xd1c   :  { %v4311_v18 = vadd.f32 %v978_v17, %v970_v15 }
 0xd1e   :  { %3859 = vtanh.f32 %v4311_v18  ;;  %v1321_v60 = vrot.slane %v4311_v18, 6 }
 0xd28   :  { %v3860_v19 = vpop.eup %3859 }
 0xd29   :  { %983 = vrot.lane.b32.xlu0 %v3860_v19, %s4030_s24 }
 0xd9b   :  { %v984_v20 = vpop.permute.xlu0 %983 }
 0xd9c   :  { %v986_v21 = vmul.f32 %v3858_v9, %v984_v20 }
 0xd9e   :  { %v988_v22 = vrot.slane %v986_v21, 4 }
 0xda0   :  { %989 = vrot.lane.b32.xlu1 %v988_v22, %s4031_s3 }
 0xe12   :  { %v990_v23 = vpop.permute.xlu1 %989 }
 0xe13   :  { %3344 = vmatmul.mubr.msk.f32.vlgmr.msra.gmra.mrb[6].mxu0 %vm175_vm3, %v990_v23 }
 0xe14   :  { %3650 = vmatpush3.bf16.msra.mxu0 %v4194_v41  ;;  %3354 = vmatprep.mubr.msk.f32.mxu0 %vm4028_vm0, %v4029_v2 }
 0xe15   :  { %3651 = vmatprep.subr.bf16.mxu0 %v4027_v1 }
 0xe18   :  { %3653 = vmatpush3.bf16.msra.mxu0 %v4198_v45 }
 0xe19   :  { %3666 = vmatprep.subr.bf16.mxu0 %v4027_v1 }
 0xe1b   :  { %3355 = vmatmul.mubr.msk.f32.vlgmr.msra.gmra.mrb[6].mxu0 %vm175_vm3, %v807_v57 }
 0xe1c   :  { %3668 = vmatpush3.bf16.msra.mxu0 %v4181_v33  ;;  %3387 = vmatprep.mubr.msk.f32.mxu0 %vm4028_vm0, %v4029_v2 }
 0xe1d   :  { %3669 = vmatprep.subr.bf16.mxu0 %v4027_v1 }
 0xe20   :  { %3671 = vmatpush3.bf16.msra.mxu0 %v4187_v35 }
 0xe21   :  { %3672 = vmatprep.subr.bf16.mxu0 %v4027_v1 }
 0xeee   :  { %v1129_v24 = vpop.f32.mrb[6].mxu0 }
 0xeef   :  { %v3782_v25 = vadd.f32 %v4215_v46, %v1129_v24  ;;  %v3356_v26 = vpop.f32.mrb[7].mxu0 }
 0xef1   :  { %3861 = vtanh.f32 %v3782_v25  ;;  %v3036_v28 = vmul.f32 -1.442695, %v3782_v25 }
 0xef3   :  { %3863 = vpow2.f32 %v3036_v28 }
 0xefb   :  { %v3862_v27 = vpop.eup %3861 }
 0xefc   :  { %1143 = vrot.lane.b32.xlu0 %v3862_v27, %s4030_s24 }
 0xefd   :  { %v3864_v30 = vpop.eup %3863 }
 0xefe   :  { %v1137_v31 = vadd.f32 1.0, %v3864_v30 }
 0xf00   :  { %3865 = vrcp.f32 %v1137_v31 }
 0xf0a   :  { %v3866_v32 = vpop.eup %3865 }
 0xf0b   :  { %v1141_v37 = vmul.f32 %v3866_v32, %v4286_v53 }
 0xf6e   :  { %v1144_v34 = vpop.permute.xlu0 %1143 }
 0xf6f   :  { %v1146_v36 = vmul.f32 %v3866_v32, %v1144_v34 }
 0xf71   :  { %1148 = vrot.lane.b32.xlu1 %v1146_v36, %s4031_s3 }
 0xfe3   :  { %v1149_v38 = vpop.permute.xlu1 %1148 }
 0xfe4   :  { %v4334_v29 = vadd.f32 %v1149_v38, %v1141_v37 }
 0xfe6   :  { %3867 = vtanh.f32 %v4334_v29 }
 0xff0   :  { %v3868_v39 = vpop.eup %3867 }
 0xff1   :  { %1154 = vrot.lane.b32.xlu0 %v3868_v39, %s4030_s24 }
0x1063   :  { %v1155_v40 = vpop.permute.xlu0 %1154 }
0x1064   :  { %v1157_v42 = vmul.f32 %v3866_v32, %v1155_v40 }
0x1066   :  { %1159 = vrot.lane.b32.xlu1 %v1157_v42, %s4031_s3 }
0x10d8   :  { %v1160_v43 = vpop.permute.xlu1 %1159 }
0x10d9   :  { %3366 = vmatmul.mubr.msk.f32.vlgmr.msra.gmra.mrb[10].mxu1 %vm175_vm3, %v1160_v43 }
0x10da   :  { %3662 = vmatpush3.bf16.msra.mxu1 %v4133_v6  ;;  %3376 = vmatprep.mubr.msk.f32.mxu1 %vm4028_vm0, %v4029_v2 }
0x10db   :  { %3663 = vmatprep.subr.bf16.mxu1 %v4027_v1 }
0x10de   :  { %3665 = vmatpush3.bf16.msra.mxu1 %v4148_v11 }
0x10df   :  { %3678 = vmatprep.subr.bf16.mxu1 %v4027_v1 }
0x10e1   :  { %3377 = vmatmul.mubr.msk.f32.vlgmr.msra.gmra.mrb[12].mxu1 %vm175_vm3, %v990_v23 }
0x10e2   :  { %3680 = vmatpush3.bf16.msra.mxu1 %v4232_v63  ;;  %3409 = vmatprep.mubr.msk.f32.mxu1 %vm4028_vm0, %v4029_v2 }
0x10e3   :  { %3681 = vmatprep.subr.bf16.mxu1 %v4027_v1 }
0x10e6   :  { %3683 = vmatpush3.bf16.msra.mxu1 %v4238_v3 }
0x10e7   :  { %3684 = vmatprep.subr.bf16.mxu1 %v4027_v1 }
0x11ac   :  { %v4353_v44 = vpop.f32.mrb[10].mxu1 }
0x11ad   :  { %v3367_v47 = vpop.f32.mrb[11].mxu1 }
0x11b4   :  { %v1305_v48 = vpop.f32.mrb[12].mxu1 }
0x11b5   :  { %v1310_v49 = vrot.slane %v1305_v48, 2  ;;  %v3378_v50 = vpop.f32.mrb[13].mxu1 }
0x11b7   :  { %v1312_v51 = vadd.f32 %v1310_v49, %v4164_v16 }
0x11b9   :  { %3869 = vtanh.f32 %v1312_v51  ;;  %v3039_v53 = vmul.f32 -1.442695, %v1312_v51 }
0x11bb   :  { %3871 = vpow2.f32 %v3039_v53 }
0x11c3   :  { %v3870_v52 = vpop.eup %3869 }
0x11c4   :  { %1325 = vrot.lane.b32.xlu0 %v3870_v52, %s4030_s24 }
0x11c5   :  { %v3872_v54 = vpop.eup %3871 }
0x11c6   :  { %v1316_v55 = vadd.f32 1.0, %v3872_v54 }
0x11c8   :  { %3873 = vrcp.f32 %v1316_v55 }
0x11d2   :  { %v3874_v56 = vpop.eup %3873 }
0x11d3   :  { %v1323_v61 = vmul.f32 %v3874_v56, %v1321_v60 }
0x1236   :  { %v1326_v57 = vpop.permute.xlu0 %1325 }
0x1237   :  { %v1328_v59 = vmul.f32 %v3874_v56, %v1326_v57 }
0x1239   :  { %1330 = vrot.lane.b32.xlu1 %v1328_v59, %s4031_s3 }
0x12ab   :  { %v1331_v62 = vpop.permute.xlu1 %1330 }
0x12ac   :  { %v4359_v0 = vadd.f32 %v1331_v62, %v1323_v61 }
0x12ae   :  { %3875 = vtanh.f32 %v4359_v0  ;;  %v1671_v47 = vrot.slane %v4359_v0, 6 }
0x12b8   :  { %v3876_v16 = vpop.eup %3875 }
0x12b9   :  { %1336 = vrot.lane.b32.xlu0 %v3876_v16, %s4030_s24 }
0x132b   :  { %v1337_v4 = vpop.permute.xlu0 %1336 }
0x132c   :  { %v1339_v5 = vmul.f32 %v3874_v56, %v1337_v4 }
0x132e   :  { %v1341_v7 = vrot.slane %v1339_v5, 6 }
0x1330   :  { %1342 = vrot.lane.b32.xlu1 %v1341_v7, %s4031_s3 }
0x13a2   :  { %v1343_v8 = vpop.permute.xlu1 %1342 }
0x13a3   :  { %3388 = vmatmul.mubr.msk.f32.vlgmr.msra.gmra.mrb[8].mxu0 %vm175_vm3, %v1343_v8 }
0x13a4   :  { %3674 = vmatpush3.bf16.msra.mxu0 %v4194_v41  ;;  %3398 = vmatprep.mubr.msk.f32.mxu0 %vm4028_vm0, %v4029_v2 }
0x13a5   :  { %3675 = vmatprep.subr.bf16.mxu0 %v4027_v1 }
0x13a8   :  { %3677 = vmatpush3.bf16.msra.mxu0 %v4198_v45 }
0x13a9   :  { %3690 = vmatprep.subr.bf16.mxu0 %v4027_v1 }
0x13ab   :  { %3399 = vmatmul.mubr.msk.f32.vlgmr.msra.gmra.mrb[8].mxu0 %vm175_vm3, %v1160_v43 }
0x13ac   :  { %3692 = vmatpush3.bf16.msra.mxu0 %v4181_v33  ;;  %3431 = vmatprep.mubr.msk.f32.mxu0 %vm4028_vm0, %v4029_v2 }
0x13ad   :  { %3693 = vmatprep.subr.bf16.mxu0 %v4027_v1 }
0x13b0   :  { %3695 = vmatpush3.bf16.msra.mxu0 %v4187_v35 }
0x13b1   :  { %3696 = vmatprep.subr.bf16.mxu0 %v4027_v1 }
0x147e   :  { %v1482_v9 = vpop.f32.mrb[8].mxu0 }
0x147f   :  { %v3783_v10 = vadd.f32 %v4215_v46, %v1482_v9  ;;  %v3400_v12 = vpop.f32.mrb[9].mxu0 }
0x1481   :  { %3877 = vtanh.f32 %v3783_v10  ;;  %v3042_v15 = vmul.f32 -1.442695, %v3783_v10 }
0x1483   :  { %3879 = vpow2.f32 %v3042_v15 }
0x148b   :  { %v3878_v13 = vpop.eup %3877 }
0x148c   :  { %1496 = vrot.lane.b32.xlu0 %v3878_v13, %s4030_s24 }
0x148d   :  { %v3880_v17 = vpop.eup %3879 }
0x148e   :  { %v1490_v18 = vadd.f32 1.0, %v3880_v17 }
0x1490   :  { %3881 = vrcp.f32 %v1490_v18 }
0x149a   :  { %v3882_v19 = vpop.eup %3881 }
0x149b   :  { %v1494_v22 = vmul.f32 %v3882_v19, %v4334_v29 }
0x14fe   :  { %v1497_v20 = vpop.permute.xlu0 %1496 }
0x14ff   :  { %v1499_v21 = vmul.f32 %v3882_v19, %v1497_v20 }
0x1501   :  { %1501 = vrot.lane.b32.xlu1 %v1499_v21, %s4031_s3 }
0x1573   :  { %v1502_v23 = vpop.permute.xlu1 %1501 }
0x1574   :  { %v4382_v24 = vadd.f32 %v1502_v23, %v1494_v22 }
0x1576   :  { %3883 = vtanh.f32 %v4382_v24 }
0x1580   :  { %v3884_v25 = vpop.eup %3883 }
0x1581   :  { %1507 = vrot.lane.b32.xlu0 %v3884_v25, %s4030_s24 }
0x15f3   :  { %v1508_v26 = vpop.permute.xlu0 %1507 }
0x15f4   :  { %v1510_v27 = vmul.f32 %v3882_v19, %v1508_v26 }
0x15f6   :  { %1512 = vrot.lane.b32.xlu1 %v1510_v27, %s4031_s3 }
0x1668   :  { %v1513_v28 = vpop.permute.xlu1 %1512 }
0x1669   :  { %3410 = vmatmul.mubr.msk.f32.vlgmr.msra.gmra.mrb[14].mxu1 %vm175_vm3, %v1513_v28 }
0x166a   :  { %3686 = vmatpush3.bf16.msra.mxu1 %v4133_v6  ;;  %3420 = vmatprep.mubr.msk.f32.mxu1 %vm4028_vm0, %v4029_v2 }
0x166b   :  { %3687 = vmatprep.subr.bf16.mxu1 %v4027_v1 }
0x166e   :  { %3689 = vmatpush3.bf16.msra.mxu1 %v4148_v11 }
0x166f   :  { %3702 = vmatprep.subr.bf16.mxu1 %v4027_v1 }
0x1671   :  { %3421 = vmatmul.mubr.msk.f32.vlgmr.msra.gmra.mrb[16].mxu1 %vm175_vm3, %v1343_v8 }
0x1672   :  { %3704 = vmatpush3.bf16.msra.mxu1 %v4232_v63  ;;  %3453 = vmatprep.mubr.msk.f32.mxu1 %vm4028_vm0, %v4029_v2 }
0x1673   :  { %3705 = vmatprep.subr.bf16.mxu1 %v4027_v1 }
0x1676   :  { %3707 = vmatpush3.bf16.msra.mxu1 %v4238_v3 }
0x1677   :  { %3708 = vmatprep.subr.bf16.mxu1 %v4027_v1 }
0x173c   :  { %v4401_v30 = vpop.f32.mrb[14].mxu1 }
0x173d   :  { %v3411_v31 = vpop.f32.mrb[15].mxu1 }
0x1744   :  { %v1658_v32 = vpop.f32.mrb[16].mxu1 }
0x1745   :  { %v1662_v34 = vadd.f32 %v1658_v32, %v4162_v14  ;;  %v3422_v36 = vpop.f32.mrb[17].mxu1 }
0x1747   :  { %3885 = vtanh.f32 %v1662_v34  ;;  %v3045_v38 = vmul.f32 -1.442695, %v1662_v34 }
0x1749   :  { %3887 = vpow2.f32 %v3045_v38 }
0x1751   :  { %v3886_v37 = vpop.eup %3885 }
0x1752   :  { %1675 = vrot.lane.b32.xlu0 %v3886_v37, %s4030_s24 }
0x1753   :  { %v3888_v29 = vpop.eup %3887 }
0x1754   :  { %v1666_v39 = vadd.f32 1.0, %v3888_v29 }
0x1756   :  { %3889 = vrcp.f32 %v1666_v39 }
0x1760   :  { %v3890_v40 = vpop.eup %3889 }
0x1761   :  { %v1673_v48 = vmul.f32 %v3890_v40, %v1671_v47 }
0x17c4   :  { %v1676_v42 = vpop.permute.xlu0 %1675 }
0x17c5   :  { %v1678_v43 = vmul.f32 %v3890_v40, %v1676_v42 }
0x17c7   :  { %1680 = vrot.lane.b32.xlu1 %v1678_v43, %s4031_s3 }
0x1839   :  { %v1681_v49 = vpop.permute.xlu1 %1680 }
0x183a   :  { %v4407_v50 = vadd.f32 %v1681_v49, %v1673_v48 }
0x183c   :  { %3891 = vtanh.f32 %v4407_v50  ;;  %v2023_v31 = vrot.slane %v4407_v50, 6 }
0x1846   :  { %v3892_v51 = vpop.eup %3891 }
0x1847   :  { %1686 = vrot.lane.b32.xlu0 %v3892_v51, %s4030_s24 }
0x18b9   :  { %v1687_v52 = vpop.permute.xlu0 %1686 }
0x18ba   :  { %v1689_v53 = vmul.f32 %v3890_v40, %v1687_v52 }
0x18bc   :  { %1691 = vrot.lane.b32.xlu1 %v1689_v53, %s4031_s3 }
0x192e   :  { %v1692_v54 = vpop.permute.xlu1 %1691 }
0x192f   :  { %3432 = vmatmul.mubr.msk.f32.vlgmr.msra.gmra.mrb[10].mxu0 %vm175_vm3, %v1692_v54 }
0x1930   :  { %3698 = vmatpush3.bf16.msra.mxu0 %v4194_v41  ;;  %3442 = vmatprep.mubr.msk.f32.mxu0 %vm4028_vm0, %v4029_v2 }
0x1931   :  { %3699 = vmatprep.subr.bf16.mxu0 %v4027_v1 }
0x1934   :  { %3701 = vmatpush3.bf16.msra.mxu0 %v4198_v45 }
0x1935   :  { %3714 = vmatprep.subr.bf16.mxu0 %v4027_v1 }
0x1937   :  { %3443 = vmatmul.mubr.msk.f32.vlgmr.msra.gmra.mrb[10].mxu0 %vm175_vm3, %v1513_v28 }
0x1938   :  { %3716 = vmatpush3.bf16.msra.mxu0 %v4181_v33  ;;  %3475 = vmatprep.mubr.msk.f32.mxu0 %vm4028_vm0, %v4029_v2 }
0x1939   :  { %3717 = vmatprep.subr.bf16.mxu0 %v4027_v1 }
0x193c   :  { %3719 = vmatpush3.bf16.msra.mxu0 %v4187_v35 }
0x193d   :  { %3720 = vmatprep.subr.bf16.mxu0 %v4027_v1 }
0x1a0a   :  { %v1831_v55 = vpop.f32.mrb[10].mxu0 }
0x1a0b   :  { %v3784_v56 = vadd.f32 %v4215_v46, %v1831_v55  ;;  %v3444_v57 = vpop.f32.mrb[11].mxu0 }
0x1a0d   :  { %3893 = vtanh.f32 %v3784_v56  ;;  %v3048_v60 = vmul.f32 -1.442695, %v3784_v56 }
0x1a0f   :  { %3895 = vpow2.f32 %v3048_v60 }
0x1a17   :  { %v3894_v59 = vpop.eup %3893 }
0x1a18   :  { %1845 = vrot.lane.b32.xlu0 %v3894_v59, %s4030_s24 }
0x1a19   :  { %v3896_v61 = vpop.eup %3895 }
0x1a1a   :  { %v1839_v62 = vadd.f32 1.0, %v3896_v61 }
0x1a1c   :  { %3897 = vrcp.f32 %v1839_v62 }
0x1a26   :  { %v3898_v0 = vpop.eup %3897 }
0x1a27   :  { %v1843_v5 = vmul.f32 %v3898_v0, %v4382_v24 }
0x1a8a   :  { %v1846_v16 = vpop.permute.xlu0 %1845 }
0x1a8b   :  { %v1848_v4 = vmul.f32 %v3898_v0, %v1846_v16 }
0x1a8d   :  { %1850 = vrot.lane.b32.xlu1 %v1848_v4, %s4031_s3 }
0x1aff   :  { %v1851_v7 = vpop.permute.xlu1 %1850 }
0x1b00   :  { %v4430_v8 = vadd.f32 %v1851_v7, %v1843_v5 }
0x1b02   :  { %3899 = vtanh.f32 %v4430_v8 }
0x1b0c   :  { %v3900_v9 = vpop.eup %3899 }
0x1b0d   :  { %1856 = vrot.lane.b32.xlu0 %v3900_v9, %s4030_s24 }
0x1b7f   :  { %v1857_v10 = vpop.permute.xlu0 %1856 }
0x1b80   :  { %v1859_v12 = vmul.f32 %v3898_v0, %v1857_v10 }
0x1b82   :  { %1861 = vrot.lane.b32.xlu1 %v1859_v12, %s4031_s3 }
0x1bf4   :  { %v1862_v13 = vpop.permute.xlu1 %1861 }
0x1bf5   :  { %3454 = vmatmul.mubr.msk.f32.vlgmr.msra.gmra.mrb[18].mxu1 %vm175_vm3, %v1862_v13 }
0x1bf6   :  { %3710 = vmatpush3.bf16.msra.mxu1 %v4133_v6  ;;  %3464 = vmatprep.mubr.msk.f32.mxu1 %vm4028_vm0, %v4029_v2 }
0x1bf7   :  { %3711 = vmatprep.subr.bf16.mxu1 %v4027_v1 }
0x1bfa   :  { %3713 = vmatpush3.bf16.msra.mxu1 %v4148_v11 }
0x1bfb   :  { %3726 = vmatprep.subr.bf16.mxu1 %v4027_v1 }
0x1bfd   :  { %3465 = vmatmul.mubr.msk.f32.vlgmr.msra.gmra.mrb[20].mxu1 %vm175_vm3, %v1692_v54 }
0x1bfe   :  { %3728 = vmatpush3.bf16.msra.mxu1 %v4232_v63  ;;  %3497 = vmatprep.mubr.msk.f32.mxu1 %vm4028_vm0, %v4029_v2 }
0x1bff   :  { %3729 = vmatprep.subr.bf16.mxu1 %v4027_v1 }
0x1c02   :  { %3731 = vmatpush3.bf16.msra.mxu1 %v4238_v3 }
0x1c03   :  { %3732 = vmatprep.subr.bf16.mxu1 %v4027_v1 }
0x1cc8   :  { %v4449_v15 = vpop.f32.mrb[18].mxu1 }
0x1cc9   :  { %v3455_v17 = vpop.f32.mrb[19].mxu1 }
0x1cd0   :  { %v2007_v18 = vpop.f32.mrb[20].mxu1 }
0x1cd1   :  { %v2012_v19 = vrot.slane %v2007_v18, 6  ;;  %v3466_v20 = vpop.f32.mrb[21].mxu1 }
0x1cd3   :  { %v2014_v21 = vadd.f32 %v2012_v19, %v4162_v14 }
0x1cd5   :  { %3901 = vtanh.f32 %v2014_v21  ;;  %v3051_v23 = vmul.f32 -1.442695, %v2014_v21 }
0x1cd7   :  { %3903 = vpow2.f32 %v3051_v23 }
0x1cdf   :  { %v3902_v22 = vpop.eup %3901 }
0x1ce0   :  { %2027 = vrot.lane.b32.xlu0 %v3902_v22, %s4030_s24 }
0x1ce1   :  { %v3904_v24 = vpop.eup %3903 }
0x1ce2   :  { %v2018_v25 = vadd.f32 1.0, %v3904_v24 }
0x1ce4   :  { %3905 = vrcp.f32 %v2018_v25 }
0x1cee   :  { %v3906_v26 = vpop.eup %3905 }
0x1cef   :  { %v2025_v32 = vmul.f32 %v3906_v26, %v2023_v31 }
0x1d52   :  { %v2028_v27 = vpop.permute.xlu0 %2027 }
0x1d53   :  { %v2030_v28 = vmul.f32 %v3906_v26, %v2028_v27 }
0x1d55   :  { %2032 = vrot.lane.b32.xlu1 %v2030_v28, %s4031_s3 }
0x1dc7   :  { %v2033_v34 = vpop.permute.xlu1 %2032 }
0x1dc8   :  { %v4455_v36 = vadd.f32 %v2033_v34, %v2025_v32 }
0x1dca   :  { %3907 = vtanh.f32 %v4455_v36  ;;  %v2376_v20 = vrot.slane %v4455_v36, 6 }
0x1dd4   :  { %v3908_v37 = vpop.eup %3907 }
0x1dd5   :  { %2038 = vrot.lane.b32.xlu0 %v3908_v37, %s4030_s24 }
0x1e47   :  { %v2039_v38 = vpop.permute.xlu0 %2038 }
0x1e48   :  { %v2041_v29 = vmul.f32 %v3906_v26, %v2039_v38 }
0x1e4a   :  { %v2043_v39 = vrot.slane %v2041_v29, 2 }
0x1e4c   :  { %2044 = vrot.lane.b32.xlu1 %v2043_v39, %s4031_s3 }
0x1ebe   :  { %v2045_v40 = vpop.permute.xlu1 %2044 }
0x1ebf   :  { %3476 = vmatmul.mubr.msk.f32.vlgmr.msra.gmra.mrb[12].mxu0 %vm175_vm3, %v2045_v40 }
0x1ec0   :  { %3722 = vmatpush3.bf16.msra.mxu0 %v4194_v41  ;;  %3486 = vmatprep.mubr.msk.f32.mxu0 %vm4028_vm0, %v4029_v2 }
0x1ec1   :  { %3723 = vmatprep.subr.bf16.mxu0 %v4027_v1 }
0x1ec4   :  { %3725 = vmatpush3.bf16.msra.mxu0 %v4198_v45 }
0x1ec5   :  { %3738 = vmatprep.subr.bf16.mxu0 %v4027_v1 }
0x1ec7   :  { %3487 = vmatmul.mubr.msk.f32.vlgmr.msra.gmra.mrb[12].mxu0 %vm175_vm3, %v1862_v13 }
0x1ec8   :  { %3740 = vmatpush3.bf16.msra.mxu0 %v4181_v33  ;;  %3519 = vmatprep.mubr.msk.f32.mxu0 %vm4028_vm0, %v4029_v2 }
0x1ec9   :  { %3741 = vmatprep.subr.bf16.mxu0 %v4027_v1 }
0x1ecc   :  { %3743 = vmatpush3.bf16.msra.mxu0 %v4187_v35 }
0x1ecd   :  { %3744 = vmatprep.subr.bf16.mxu0 %v4027_v1 }
0x1f9a   :  { %v2184_v42 = vpop.f32.mrb[12].mxu0 }
0x1f9b   :  { %v3785_v43 = vadd.f32 %v4215_v46, %v2184_v42  ;;  %v3488_v47 = vpop.f32.mrb[13].mxu0 }
0x1f9d   :  { %3909 = vtanh.f32 %v3785_v43  ;;  %v3054_v49 = vmul.f32 -1.442695, %v3785_v43 }
0x1f9f   :  { %3911 = vpow2.f32 %v3054_v49 }
0x1fa7   :  { %v3910_v48 = vpop.eup %3909 }
0x1fa8   :  { %2198 = vrot.lane.b32.xlu0 %v3910_v48, %s4030_s24 }
0x1fa9   :  { %v3912_v50 = vpop.eup %3911 }
0x1faa   :  { %v2192_v51 = vadd.f32 1.0, %v3912_v50 }
0x1fac   :  { %3913 = vrcp.f32 %v2192_v51 }
0x1fb6   :  { %v3914_v52 = vpop.eup %3913 }
0x1fb7   :  { %v2196_v55 = vmul.f32 %v3914_v52, %v4430_v8 }
0x201a   :  { %v2199_v53 = vpop.permute.xlu0 %2198 }
0x201b   :  { %v2201_v54 = vmul.f32 %v3914_v52, %v2199_v53 }
0x201d   :  { %2203 = vrot.lane.b32.xlu1 %v2201_v54, %s4031_s3 }
0x208f   :  { %v2204_v56 = vpop.permute.xlu1 %2203 }
0x2090   :  { %v4478_v57 = vadd.f32 %v2204_v56, %v2196_v55 }
0x2092   :  { %3915 = vtanh.f32 %v4478_v57 }
0x209c   :  { %v3916_v59 = vpop.eup %3915 }
0x209d   :  { %2209 = vrot.lane.b32.xlu0 %v3916_v59, %s4030_s24 }
0x210f   :  { %v2210_v60 = vpop.permute.xlu0 %2209 }
0x2110   :  { %v2212_v61 = vmul.f32 %v3914_v52, %v2210_v60 }
0x2112   :  { %2214 = vrot.lane.b32.xlu1 %v2212_v61, %s4031_s3 }
0x2184   :  { %v2215_v62 = vpop.permute.xlu1 %2214 }
0x2185   :  { %3498 = vmatmul.mubr.msk.f32.vlgmr.msra.gmra.mrb[22].mxu1 %vm175_vm3, %v2215_v62 }
0x2186   :  { %3734 = vmatpush3.bf16.msra.mxu1 %v4133_v6  ;;  %3508 = vmatprep.mubr.msk.f32.mxu1 %vm4028_vm0, %v4029_v2 }
0x2187   :  { %3735 = vmatprep.subr.bf16.mxu1 %v4027_v1 }
0x218a   :  { %3737 = vmatpush3.bf16.msra.mxu1 %v4148_v11 }
0x218b   :  { %3750 = vmatprep.subr.bf16.mxu1 %v4027_v1 }
0x218d   :  { %3509 = vmatmul.mubr.msk.f32.vlgmr.msra.gmra.mrb[24].mxu1 %vm175_vm3, %v2045_v40 }
0x218e   :  { %3752 = vmatpush3.bf16.msra.mxu1 %v4232_v63  ;;  %3541 = vmatprep.mubr.msk.f32.mxu1 %vm4028_vm0, %v4029_v2 }
0x218f   :  { %3753 = vmatprep.subr.bf16.mxu1 %v4027_v1 }
0x2192   :  { %3755 = vmatpush3.bf16.msra.mxu1 %v4238_v3 }
0x2193   :  { %3756 = vmatprep.subr.bf16.mxu1 %v4027_v1 }
0x2258   :  { %v4497_v0 = vpop.f32.mrb[22].mxu1 }
0x2259   :  { %v3499_v16 = vpop.f32.mrb[23].mxu1 }
0x2260   :  { %v2360_v4 = vpop.f32.mrb[24].mxu1 }
0x2261   :  { %v2365_v5 = vrot.slane %v2360_v4, 4  ;;  %v3510_v7 = vpop.f32.mrb[25].mxu1 }
0x2263   :  { %v2367_v8 = vadd.f32 %v2365_v5, %v4162_v14 }
0x2265   :  { %3917 = vtanh.f32 %v2367_v8  ;;  %v3057_v10 = vmul.f32 -1.442695, %v2367_v8 }
0x2267   :  { %3919 = vpow2.f32 %v3057_v10  ;;  %v3949_v10 = vld [vmem:[%s4592_s6] ss:$0 sm:$0xff]  ;;  %s4032_s6 = smov 1  }
0x226f   :  { %v3918_v9 = vpop.eup %3917 }
0x2270   :  { %2380 = vrot.lane.b32.xlu0 %v3918_v9, %s4030_s24 }
0x2271   :  { %v3920_v12 = vpop.eup %3919 }
0x2272   :  { %v2371_v13 = vadd.f32 1.0, %v3920_v12 }
0x2274   :  { %3921 = vrcp.f32 %v2371_v13 }
0x227e   :  { %v3922_v17 = vpop.eup %3921 }
0x227f   :  { %v2378_v21 = vmul.f32 %v3922_v17, %v2376_v20 }
0x22e2   :  { %v2381_v18 = vpop.permute.xlu0 %2380 }
0x22e3   :  { %v2383_v19 = vmul.f32 %v3922_v17, %v2381_v18 }
0x22e5   :  { %2385 = vrot.lane.b32.xlu1 %v2383_v19, %s4031_s3 }
0x2357   :  { %v2386_v22 = vpop.permute.xlu1 %2385 }
0x2358   :  { %v4503_v23 = vadd.f32 %v2386_v22, %v2378_v21 }
0x235a   :  { %3923 = vtanh.f32 %v4503_v23  ;;  %v2729_v60 = vrot.slane %v4503_v23, 6 }
0x2364   :  { %v3924_v24 = vpop.eup %3923 }
0x2365   :  { %2391 = vrot.lane.b32.xlu0 %v3924_v24, %s4030_s24  ;;  %v3950_v24 = vld [vmem:[#allocation2] ss:$0 sm:$0xff] }
0x23d7   :  { %v2392_v25 = vpop.permute.xlu0 %2391 }
0x23d8   :  { %v2394_v26 = vmul.f32 %v3922_v17, %v2392_v25  ;;  %v877_v25 = vadd.f32 %v3950_v24, %v4305_v58  ;;  %v1932_v58 = vadd.f32 %v3950_v24, %v4449_v15 }
0x23da   :  { %v2396_v27 = vrot.slane %v2394_v26, 4  ;;  %v1583_v26 = vadd.f32 %v3950_v24, %v4401_v30 }
0x23dc   :  { %2397 = vrot.lane.b32.xlu1 %v2396_v27, %s4031_s3  ;;  %v2285_v27 = vadd.f32 %v3950_v24, %v4497_v0 }
0x244e   :  { %v2398_v28 = vpop.permute.xlu1 %2397 }
0x244f   :  { %3520 = vmatmul.mubr.msk.f32.vlgmr.msra.gmra.mrb[14].mxu0 %vm175_vm3, %v2398_v28 }
0x2450   :  { %3746 = vmatpush3.bf16.msra.mxu0 %v4194_v41  ;;  %3530 = vmatprep.mubr.msk.f32.mxu0 %vm4028_vm0, %v4029_v2 }
0x2451   :  { %3747 = vmatprep.subr.bf16.mxu0 %v4027_v1 }
0x2454   :  { %3749 = vmatpush3.bf16.msra.mxu0 %v4198_v45 }
0x2455   :  { %3762 = vmatprep.subr.bf16.mxu0 %v4027_v1 }
0x2457   :  { %3531 = vmatmul.mubr.msk.f32.vlgmr.msra.gmra.mrb[14].mxu0 %vm175_vm3, %v2215_v62 }
0x2458   :  { %3764 = vmatpush3.bf16.msra.mxu0 %v4181_v33  ;;  %3563 = vmatprep.mubr.msk.f32.mxu0 %vm4028_vm0, %v4029_v2 }
0x2459   :  { %3765 = vmatprep.subr.bf16.mxu0 %v4027_v1 }
0x245c   :  { %3767 = vmatpush3.bf16.msra.mxu0 %v4187_v35 }
0x245d   :  { %3768 = vmatprep.subr.bf16.mxu0 %v4027_v1 }
0x252a   :  { %v2537_v31 = vpop.f32.mrb[14].mxu0 }
0x252b   :  { %v3786_v32 = vadd.f32 %v4215_v46, %v2537_v31  ;;  %v3532_v34 = vpop.f32.mrb[15].mxu0 }
0x252c   :  { %v1230_v34 = vadd.f32 %v3950_v24, %v4353_v44 }
0x252d   :  { %3925 = vtanh.f32 %v3786_v32  ;;  %v3060_v37 = vmul.f32 -1.442695, %v3786_v32 }
0x252f   :  { %3927 = vpow2.f32 %v3060_v37 }
0x2537   :  { %v3926_v36 = vpop.eup %3925 }
0x2538   :  { %2551 = vrot.lane.b32.xlu0 %v3926_v36, %s4030_s24 }
0x2539   :  { %v3928_v33 = vpop.eup %3927 }
0x253a   :  { %v2545_v38 = vadd.f32 1.0, %v3928_v33 }
0x253c   :  { %3929 = vrcp.f32 %v2545_v38 }
0x2546   :  { %v3930_v29 = vpop.eup %3929 }
0x2547   :  { %v2549_v35 = vmul.f32 %v3930_v29, %v4478_v57 }
0x25aa   :  { %v2552_v39 = vpop.permute.xlu0 %2551 }
0x25ab   :  { %v2554_v40 = vmul.f32 %v3930_v29, %v2552_v39 }
0x25ad   :  { %2556 = vrot.lane.b32.xlu1 %v2554_v40, %s4031_s3 }
0x261f   :  { %v2557_v42 = vpop.permute.xlu1 %2556 }
0x2620   :  { %v4526_v43 = vadd.f32 %v2557_v42, %v2549_v35 }
0x2622   :  { %3931 = vtanh.f32 %v4526_v43 }
0x262c   :  { %v3932_v46 = vpop.eup %3931 }
0x262d   :  { %2562 = vrot.lane.b32.xlu0 %v3932_v46, %s4030_s24 }
0x269f   :  { %v2563_v47 = vpop.permute.xlu0 %2562 }
0x26a0   :  { %v2565_v48 = vmul.f32 %v3930_v29, %v2563_v47 }
0x26a2   :  { %2567 = vrot.lane.b32.xlu1 %v2565_v48, %s4031_s3 }
0x2714   :  { %v2568_v49 = vpop.permute.xlu1 %2567 }
0x2715   :  { %3542 = vmatmul.mubr.msk.f32.vlgmr.msra.gmra.mrb[26].mxu1 %vm175_vm3, %v2568_v49 }
0x2716   :  { %3758 = vmatpush3.bf16.msra.mxu1 %v4133_v6  ;;  %3552 = vmatprep.mubr.msk.f32.mxu1 %vm4028_vm0, %v4029_v2 }
0x2717   :  { %3759 = vmatprep.subr.bf16.mxu1 %v4027_v1 }
0x271a   :  { %3761 = vmatpush3.bf16.msra.mxu1 %v4148_v11 }
0x271b   :  { %3774 = vmatprep.subr.bf16.mxu1 %v4027_v1 }
0x271d   :  { %3553 = vmatmul.mubr.msk.f32.vlgmr.msra.gmra.mrb[28].mxu1 %vm175_vm3, %v2398_v28 }
0x271e   :  { %3776 = vmatpush3.bf16.msra.mxu1 %v4232_v63  ;;  %3585 = vmatprep.mubr.msk.f32.mxu1 %vm4028_vm0, %v4029_v2 }
0x271f   :  { %3777 = vmatprep.subr.bf16.mxu1 %v4027_v1 }
0x2722   :  { %3779 = vmatpush3.bf16.msra.mxu1 %v4238_v3 }
0x27e8   :  { %v4544_v6 = vpop.f32.mrb[26].mxu1 }
0x27e9   :  { %v3543_v50 = vpop.f32.mrb[27].mxu1  ;;  %v2638_v30 = vadd.f32 %v3950_v24, %v4544_v6 }
0x27f0   :  { %v2713_v51 = vpop.f32.mrb[28].mxu1 }
0x27f1   :  { %v2718_v52 = vrot.slane %v2713_v51, 2  ;;  %v3554_v53 = vpop.f32.mrb[29].mxu1 }
0x27f3   :  { %v2720_v11 = vadd.f32 %v2718_v52, %v4162_v14 }
0x27f5   :  { %3933 = vtanh.f32 %v2720_v11  ;;  %v3063_v63 = vmul.f32 -1.442695, %v2720_v11 }
0x27f7   :  { %3935 = vpow2.f32 %v3063_v63 }
0x27ff   :  { %v3934_v54 = vpop.eup %3933 }
0x2800   :  { %2733 = vrot.lane.b32.xlu0 %v3934_v54, %s4030_s24 }
0x2801   :  { %v3936_v55 = vpop.eup %3935 }
0x2802   :  { %v2724_v56 = vadd.f32 1.0, %v3936_v55 }
0x2804   :  { %3937 = vrcp.f32 %v2724_v56 }
0x280e   :  { %v3938_v57 = vpop.eup %3937 }
0x280f   :  { %v2731_v61 = vmul.f32 %v3938_v57, %v2729_v60 }
0x2872   :  { %v2734_v59 = vpop.permute.xlu0 %2733 }
0x2873   :  { %v2736_v3 = vmul.f32 %v3938_v57, %v2734_v59 }
0x2875   :  { %2738 = vrot.lane.b32.xlu1 %v2736_v3, %s4031_s3 }
0x28e7   :  { %v2739_v62 = vpop.permute.xlu1 %2738 }
0x28e8   :  { %v2741_v16 = vadd.f32 %v2739_v62, %v2731_v61 }
0x28ea   :  { %3939 = vtanh.f32 %v2741_v16 }
0x28f4   :  { %v3940_v14 = vpop.eup %3939 }
0x28f5   :  { %2744 = vrot.lane.b32.xlu0 %v3940_v14, %s4030_s24 }
0x2967   :  { %v2745_v4 = vpop.permute.xlu0 %2744 }
0x2968   :  { %v2747_v5 = vmul.f32 %v3938_v57, %v2745_v4 }
0x296a   :  { %v2749_v7 = vrot.slane %v2747_v5, 6 }
0x296c   :  { %2750 = vrot.lane.b32.xlu1 %v2749_v7, %s4031_s3 }
0x29de   :  { %v2751_v8 = vpop.permute.xlu1 %2750 }
0x29df   :  { %3564 = vmatmul.mubr.msk.f32.vlgmr.msra.gmra.mrb[16].mxu0 %vm175_vm3, %v2751_v8 }
0x29e0   :  { %3770 = vmatpush3.bf16.msra.mxu0 %v4194_v41  ;;  %3574 = vmatprep.mubr.msk.f32.mxu0 %vm4028_vm0, %v4029_v2 }
0x29e1   :  { %3771 = vmatprep.subr.bf16.mxu0 %v4027_v1 }
0x29e4   :  { %3773 = vmatpush3.bf16.msra.mxu0 %v4198_v45 }
0x29e7   :  { %3575 = vmatmul.mubr.msk.f32.vlgmr.msra.gmra.mrb[16].mxu0 %vm175_vm3, %v2568_v49 }
0x2aba   :  { %v2890_v9 = vpop.f32.mrb[16].mxu0 }
0x2abb   :  { %v3787_v12 = vadd.f32 %v3949_v10, %v2890_v9  ;;  %v3576_v13 = vpop.f32.mrb[17].mxu0 }
0x2abd   :  { %3941 = vtanh.f32 %v3787_v12  ;;  %v3066_v41 = vmul.f32 -1.442695, %v3787_v12 }
0x2abf   :  { %3943 = vpow2.f32 %v3066_v41 }
0x2ac7   :  { %v3942_v17 = vpop.eup %3941 }
0x2ac8   :  { %2904 = vrot.lane.b32.xlu0 %v3942_v17, %s4030_s24 }
0x2ac9   :  { %v3944_v2 = vpop.eup %3943 }
0x2aca   :  { %v2898_v18 = vadd.f32 1.0, %v3944_v2 }
0x2acc   :  { %3945 = vrcp.f32 %v2898_v18 }
0x2ad6   :  { %v3946_v1 = vpop.eup %3945 }
0x2ad7   :  { %v2902_v20 = vmul.f32 %v3946_v1, %v4526_v43 }
0x2b3a   :  { %v2905_v45 = vpop.permute.xlu0 %2904 }
0x2b3b   :  { %v2907_v19 = vmul.f32 %v3946_v1, %v2905_v45 }
0x2b3d   :  { %2909 = vrot.lane.b32.xlu1 %v2907_v19, %s4031_s3 }
0x2baf   :  { %v2910_v21 = vpop.permute.xlu1 %2909 }
0x2bb0   :  { %v2912_v22 = vadd.f32 %v2910_v21, %v2902_v20 }
0x2bb2   :  { %3947 = vtanh.f32 %v2912_v22 }
0x2bbc   :  { %v3948_v23 = vpop.eup %3947 }
0x2bbd   :  { %2915 = vrot.lane.b32.xlu0 %v3948_v23, %s4030_s24  ;;  %s3006_s24 = sshll.u32 %s4039_s2, 4  ;;  %s3007_s24 = int_to_ptr.vmem [resolvable:$true] %s3006_s24 }
0x2bbe   :  { %p4000_p3 = scmp.lt.s32.totalorder %s3007_s24, %s3007_s24 }
0x2bc1   :  { %881 = vrot.lane.b32.xlu0 %v877_v25, %s4032_s6 }
0x2bc5   :  { %1587 = vrot.lane.b32.xlu0 %v1583_v26, %s4033_s8 }
0x2bc9   :  { %2289 = vrot.lane.b32.xlu0 %v2285_v27, %s4034_s20 }
0x2c2f   :  { %v2916_v28 = vpop.permute.xlu0 %2915 }
0x2c30   :  { %v2918_v31 = vmul.f32 %v3946_v1, %v2916_v28 }
0x2c32   :  { %2920 = vrot.lane.b32.xlu1 %v2918_v31, %s4031_s3  ;;  %s3995_s3 = scalar_lea.vmem %s3007_s24, 32 }
0x2c33   :  { %v882_v32 = vpop.permute.xlu0 %881  ;;  %p3996_p2 = scmp.ne.s32.totalorder %s3007_s24, %s3995_s3  ;;  %p4001_p4 = scmp.lt.s32.totalorder %s3995_s3, %s3995_s3 }
0x2c34   :  { %885 = vst.msk [vmem:[#allocation8] sm:$0x3] %vm884_vm5, %v882_v32 }
0x2c35   :  { %p4002_p5 = por %p4001_p4, %p4000_p3 }
0x2c36   :  { %1234 = vrot.lane.b32.xlu1 %v1230_v34, %s4035_s21 }
0x2c37   :  { %v1588_v36 = vpop.permute.xlu0 %1587  ;;  %p4003_p6 = pnand %p4002_p5, %p3996_p2 }
0x2c3a   :  { %1936 = vrot.lane.b32.xlu1 %v1932_v58, %s4036_s22 }
0x2c3b   :  { %v2290_v33 = vpop.permute.xlu0 %2289 }
0x2c3e   :  { %2642 = vrot.lane.b32.xlu1 %v2638_v30, %s4037_s23 }
0x2ca4   :  { %v2921_v0 = vpop.permute.xlu1 %2920 }
0x2ca5   :  { %3586 = vmatmul.mubr.msk.f32.vlgmr.msra.gmra.mrb[30].mxu1 %vm175_vm3, %v2921_v0 }
0x2ca8   :  { %v1235_v37 = vpop.permute.xlu1 %1234 }
0x2ca9   :  { %1238 = vst.msk [vmem:[#allocation8] sm:$0x3] %vm1237_vm6, %v1235_v37 }
0x2caa   :  { %1591 = vst.msk [vmem:[#allocation8] sm:$0x3] %vm1590_vm7, %v1588_v36 }
0x2cac   :  { %v1937_v44 = vpop.permute.xlu1 %1936 }
0x2cad   :  { %1940 = vst.msk [vmem:[#allocation8] sm:$0x3] %vm1939_vm8, %v1937_v44 }
0x2cae   :  { %2293 = vst.msk [vmem:[#allocation8] sm:$0x3] %vm2292_vm9, %v2290_v33 }
0x2cb0   :  { %v2643_v15 = vpop.permute.xlu1 %2642 }
0x2cb1   :  { %2646 = vst.msk [vmem:[#allocation8] sm:$0x3] %vm2645_vm10, %v2643_v15 }
0x2d78   :  { %v2990_v38 = vpop.f32.mrb[30].mxu1 }
0x2d79   :  { %v2991_v29 = vadd.f32 %v3950_v24, %v2990_v38  ;;  %v3587_v39 = vpop.f32.mrb[31].mxu1 }
0x2d7b   :  { %2995 = vrot.lane.b32.xlu0 %v2991_v29, %s4038_s0 }
0x2ded   :  { %v2996_v40 = vpop.permute.xlu0 %2995 }
0x2dee   :  { %2999 = vst.msk [vmem:[#allocation8] sm:$0x3] %vm2998_vm11, %v2996_v40 }
0x2def   :  { %4006 = shalt.err (!%p4003_p6)
}
0x2df0   :  { %s4007_s27 = scalar_lea.hbm %s4595_s9, 32 }
0x2df1   :  { %p4008_p7 = scmp.ne.s32.totalorder %s4595_s9, %s4007_s27  ;;  %p4011_p8 = scmp.lt.u32.totalorder %s4007_s27, %s4595_s9 }
0x2df3   :  { %p4013_p9 = pnand %p4011_p8, %p4008_p7 }
0x2df5   :  { %4016 = shalt.err (!%p4013_p9)
}
0x2df6   :  { %3009 = dma.vmem_to_hbm [thread:$0]  %s3007_s24, 32, %s4595_s9, [#allocation5]  }
0x2df7   :  { %4021 = dma.done.wait [#allocation5], 32  }
0x2df8   :  { %4022 = vsyncadd [#allocation5], 4294967264 }
0x2df9   :  { %3013 = vsyncpa [#allocation4], 1 }
0x2dfa   :  { %3014 = vsyncpa [#allocation7], 1 }
0x2dfb   :  { %3015 = vsyncpa [#allocation5], 1 }

</bundles_post_ra>
